<compile_context>
chip_gen: v5e
topology: v5e:2x2
jax: 0.10.0
libtpu: 0.0.40
codegen_flags: <defaults>
</compile_context>

<pallas_src>
import math
import functools

import numpy as np
import jax
import jax.numpy as jnp
from jax.experimental import pallas as pl
from jax.experimental.pallas import tpu as pltpu


# ----------------------------------------------------------------------------
# Small-model configuration (shapes consistent with the PyTorch __init__,
# scaled down for a quick synthetic run).
# ----------------------------------------------------------------------------
CFG = dict(
    d_emb=64,
    d_model=32,
    n_heads=4,
    dim_ff=64,
    num_layers=2,
    num_go_terms=16,
    max_len=64,
    num_buckets=32,
    max_distance=128,
)

_INV_SQRT2 = 1.0 / math.sqrt(2.0)


# ----------------------------------------------------------------------------
# Helpers
# ----------------------------------------------------------------------------
def _layernorm_val(x, g, b):
    """LayerNorm over the last dim (eps=1e-5, biased var), f32 math."""
    x = x.astype(jnp.float32)
    mean = jnp.mean(x, axis=-1, keepdims=True)
    c = x - mean
    var = jnp.mean(c * c, axis=-1, keepdims=True)
    return c * jax.lax.rsqrt(var + 1e-5) * g + b


def _pick_tile(total, cap):
    """Largest multiple-of-8 divisor of `total` that is <= cap; fallback: full dim."""
    best = None
    t = 8
    while t <= min(total, cap):
        if total % t == 0:
            best = t
        t += 8
    return best if best is not None else total


def _nbytes(shape, dtype):
    return int(math.prod(shape)) * np.dtype(dtype).itemsize


def _vmem_limit(block_bytes, scratch_bytes=0):
    """Size scoped VMEM from actual block bytes (x2 double buffer) + slack."""
    need = 2 * block_bytes + scratch_bytes
    need = int(need * 1.5) + (4 << 20)
    return int(max(8 << 20, min(need, 64 << 20)))   # cap at v7x physical VMEM


# ----------------------------------------------------------------------------
# Kernel 1: fused front-end projection
#   out[b, rows] = feat[b, rows] @ W_comb (bf16) + b_comb + pos[rows]
# ----------------------------------------------------------------------------
def _frontend_kernel(feat_ref, w_ref, b_ref, pos_ref, o_ref):
    y = jnp.dot(feat_ref[0].astype(jnp.bfloat16), w_ref[...],
                preferred_element_type=jnp.float32)
    o_ref[0] = (y + b_ref[...] + pos_ref[...]).astype(o_ref.dtype)


def frontend_proj(feat, w_bf16, b_comb, pos):
    B, L, K = feat.shape
    D = w_bf16.shape[1]
    tl = _pick_tile(L, 256)
    blocks = (_nbytes((1, tl, K), feat.dtype) + _nbytes((K, D), jnp.bfloat16)
              + _nbytes((1, D), jnp.float32) + _nbytes((tl, D), jnp.float32)
              + _nbytes((1, tl, D), jnp.float32))
    return pl.pallas_call(
        _frontend_kernel,
        grid=(B, L // tl),
        in_specs=[
            pl.BlockSpec((1, tl, K), lambda b, t: (b, t, 0)),
            pl.BlockSpec((K, D), lambda b, t: (0, 0)),
            pl.BlockSpec((1, D), lambda b, t: (0, 0)),
            pl.BlockSpec((tl, D), lambda b, t: (t, 0)),
        ],
        out_specs=pl.BlockSpec((1, tl, D), lambda b, t: (b, t, 0)),
        out_shape=jax.ShapeDtypeStruct((B, L, D), jnp.float32),
        compiler_params=pltpu.CompilerParams(
            dimension_semantics=("parallel", "parallel"),
            vmem_limit_bytes=_vmem_limit(blocks)),
    )(feat, w_bf16, b_comb.reshape(1, D).astype(jnp.float32),
      pos.astype(jnp.float32))


# ----------------------------------------------------------------------------
# Kernel 2: pairwise scalar bias (lane-dense VPU weighted sum, row-tiled)
#   out[b, i, j] = w0*eucl + w1*pae + w2*ev0 + w3*ev1 + w4*ev2 + w5    (bf16 out)
# No [B,5,L,L] concat and no edge-vector transpose: 5 separate [B,L,L] planes.
# ----------------------------------------------------------------------------
def _pairwise_kernel(w_ref, e_ref, p_ref, v0_ref, v1_ref, v2_ref, o_ref):
    acc = (e_ref[0] * w_ref[0] + p_ref[0] * w_ref[1]
           + v0_ref[0] * w_ref[2] + v1_ref[0] * w_ref[3] + v2_ref[0] * w_ref[4]
           + w_ref[5])
    o_ref[0] = acc.astype(o_ref.dtype)


def pairwise_scalar(w6, eucl, pae, ev0, ev1, ev2):
    B, L, _ = eucl.shape
    tl = _pick_tile(L, 256)
    plane = pl.BlockSpec((1, tl, L), lambda b, t: (b, t, 0))
    blocks = 5 * _nbytes((1, tl, L), jnp.float32) + _nbytes((1, tl, L), jnp.bfloat16)
    return pl.pallas_call(
        _pairwise_kernel,
        grid=(B, L // tl),
        in_specs=[pl.BlockSpec(memory_space=pltpu.MemorySpace.SMEM),   # 6 scalar weights
                  plane, plane, plane, plane, plane],
        out_specs=pl.BlockSpec((1, tl, L), lambda b, t: (b, t, 0)),
        out_shape=jax.ShapeDtypeStruct((B, L, L), jnp.bfloat16),
        compiler_params=pltpu.CompilerParams(
            dimension_semantics=("parallel", "parallel"),
            vmem_limit_bytes=_vmem_limit(blocks)),
    )(w6, eucl, pae, ev0, ev1, ev2)


# ----------------------------------------------------------------------------
# Kernel 3: fused attention block, grid = (batch, q_row_tiles)
#   LN1 -> Q/K/V proj (bf16 MXU) -> per-head biased softmax attention
#   -> heads written to VMEM scratch -> ONE out_proj matmul -> residual add.
# Bias is composed per tile from rel-pos (f32, batch-invariant), pairwise (bf16)
# and additive pad mask — never materialized as a [B,N,N] f32 array in HBM.
# ----------------------------------------------------------------------------
def _attn_block_kernel(xq_ref, xf_ref, rp_ref, pair_ref, mask_ref,
                       g_ref, b_ref,
                       wq_ref, wk_ref, wv_ref, bq_ref, bk_ref, bv_ref,
                       wo_ref, bo_ref,
                       o_ref, attn_acc, *, n_heads, scale):
    xq = xq_ref[0].astype(jnp.float32)                  # [TQ, D] residual / query rows
    xf = xf_ref[0].astype(jnp.float32)                  # [N,  D] key / value rows
    D = xf.shape[-1]
    dh = D // n_heads

    zq = _layernorm_val(xq, g_ref[...], b_ref[...]).astype(jnp.bfloat16)
    zf = _layernorm_val(xf, g_ref[...], b_ref[...]).astype(jnp.bfloat16)

    q = jnp.dot(zq, wq_ref[...], preferred_element_type=jnp.float32) + bq_ref[...]
    k = jnp.dot(zf, wk_ref[...], preferred_element_type=jnp.float32) + bk_ref[...]
    v = jnp.dot(zf, wv_ref[...], preferred_element_type=jnp.float32) + bv_ref[...]

    # per-tile bias composed in-kernel
    bias = rp_ref[...] + pair_ref[0].astype(jnp.float32) + mask_ref[0]   # [TQ, N]

    for h in range(n_heads):                            # small static H; oh -> scratch
        sl = slice(h * dh, (h + 1) * dh)
        qh = q[:, sl].astype(jnp.bfloat16)
        kh = k[:, sl].astype(jnp.bfloat16)
        vh = v[:, sl].astype(jnp.bfloat16)
        s = jax.lax.dot_general(qh, kh, (((1,), (1,)), ((), ())),
                                preferred_element_type=jnp.float32) * scale + bias
        m = jnp.max(s, axis=-1, keepdims=True)
        p = jnp.exp(s - m)
        l = jnp.sum(p, axis=-1, keepdims=True)
        p = p * pl.reciprocal(l, approx=True)           # EUP slot (approx recip)
        attn_acc[:, sl] = jnp.dot(p.astype(jnp.bfloat16), vh,
                                  preferred_element_type=jnp.float32)

    # single out_proj matmul over the full D contraction dim
    out = jnp.dot(attn_acc[...].astype(jnp.bfloat16), wo_ref[...],
                  preferred_element_type=jnp.float32) + bo_ref[...]
    o_ref[0] = (xq + out).astype(o_ref.dtype)


def attn_block(x, rp, pair, mask_add, g, b, in_w, in_b, out_w, out_b,
               *, n_heads, scale, tq=None):
    B, N, D = x.shape
    tq = tq if tq is not None else _pick_tile(N, 128)
    assert N % tq == 0, "q tile must divide N"

    wq = in_w[:, :D].astype(jnp.bfloat16)
    wk = in_w[:, D:2 * D].astype(jnp.bfloat16)
    wv = in_w[:, 2 * D:].astype(jnp.bfloat16)
    bq = in_b[:D].reshape(1, D).astype(jnp.float32)
    bk = in_b[D:2 * D].reshape(1, D).astype(jnp.float32)
    bv = in_b[2 * D:].reshape(1, D).astype(jnp.float32)
    wo = out_w.astype(jnp.bfloat16)
    bo = out_b.reshape(1, D).astype(jnp.float32)
    g2 = g.reshape(1, D).astype(jnp.float32)
    b2 = b.reshape(1, D).astype(jnp.float32)

    blocks = (_nbytes((1, tq, D), jnp.float32) + _nbytes((1, N, D), jnp.float32)
              + _nbytes((tq, N), jnp.float32) + _nbytes((1, tq, N), jnp.bfloat16)
              + _nbytes((1, 1, N), jnp.float32)
              + 4 * _nbytes((D, D), jnp.bfloat16) + 6 * _nbytes((1, D), jnp.float32)
              + _nbytes((1, tq, D), jnp.float32))
    scratch = _nbytes((tq, D), jnp.float32)

    return pl.pallas_call(
        functools.partial(_attn_block_kernel, n_heads=n_heads, scale=scale),
        grid=(B, N // tq),
        in_specs=[
            pl.BlockSpec((1, tq, D), lambda bi, qt: (bi, qt, 0)),   # query / residual rows
            pl.BlockSpec((1, N, D), lambda bi, qt: (bi, 0, 0)),     # key / value rows
            pl.BlockSpec((tq, N), lambda bi, qt: (qt, 0)),          # rel-pos bias (batch-invariant)
            pl.BlockSpec((1, tq, N), lambda bi, qt: (bi, qt, 0)),   # pairwise bias (bf16)
            pl.BlockSpec((1, 1, N), lambda bi, qt: (bi, 0, 0)),     # additive pad mask
            pl.BlockSpec((1, D), lambda bi, qt: (0, 0)),            # ln1 gamma
            pl.BlockSpec((1, D), lambda bi, qt: (0, 0)),            # ln1 beta
            pl.BlockSpec((D, D), lambda bi, qt: (0, 0)),            # Wq (bf16)
            pl.BlockSpec((D, D), lambda bi, qt: (0, 0)),            # Wk (bf16)
            pl.BlockSpec((D, D), lambda bi, qt: (0, 0)),            # Wv (bf16)
            pl.BlockSpec((1, D), lambda bi, qt: (0, 0)),            # bq
            pl.BlockSpec((1, D), lambda bi, qt: (0, 0)),            # bk
            pl.BlockSpec((1, D), lambda bi, qt: (0, 0)),            # bv
            pl.BlockSpec((D, D), lambda bi, qt: (0, 0)),            # Wo (bf16)
            pl.BlockSpec((1, D), lambda bi, qt: (0, 0)),            # bo
        ],
        out_specs=pl.BlockSpec((1, tq, D), lambda bi, qt: (bi, qt, 0)),
        out_shape=jax.ShapeDtypeStruct((B, N, D), jnp.float32),
        scratch_shapes=[pltpu.VMEM((tq, D), jnp.float32)],
        compiler_params=pltpu.CompilerParams(
            dimension_semantics=("parallel", "parallel"),
            vmem_limit_bytes=_vmem_limit(blocks, scratch)),
    )(x, x, rp, pair, mask_add, g2, b2, wq, wk, wv, bq, bk, bv, wo, bo)


# ----------------------------------------------------------------------------
# Kernel 4: fused feed-forward block.  Batch collapsed to rows, grid over
# row tiles:  LN2 -> FF1 (bf16 MXU) -> exact GELU (f32) -> FF2 -> residual add.
# ----------------------------------------------------------------------------
def _ff_block_kernel(x_ref, g_ref, b_ref, w1_ref, b1_ref, w2_ref, b2_ref, o_ref):
    x = x_ref[...].astype(jnp.float32)                  # [TR, D]
    z = _layernorm_val(x, g_ref[...], b_ref[...])
    h = jnp.dot(z.astype(jnp.bfloat16), w1_ref[...],
                preferred_element_type=jnp.float32) + b1_ref[...]
    h = 0.5 * h * (1.0 + jax.lax.erf(h * _INV_SQRT2))   # exact GELU (torch default), f32
    y = jnp.dot(h.astype(jnp.bfloat16), w2_ref[...],
                preferred_element_type=jnp.float32) + b2_ref[...]
    o_ref[...] = (x + y).astype(o_ref.dtype)


def ff_block(x, g, b, w1, b1, w2, b2, *, tile_rows=None):
    B, N, D = x.shape
    F = w1.shape[1]
    R = B * N
    xr = x.reshape(R, D)                                # free reshape (contiguous)
    tr = tile_rows if tile_rows is not None else _pick_tile(R, 256)
    assert R % tr == 0
    w1b = w1.astype(jnp.bfloat16)
    w2b = w2.astype(jnp.bfloat16)
    blocks = (2 * _nbytes((tr, D), jnp.float32) + _nbytes((D, F), jnp.bfloat16)
              + _nbytes((F, D), jnp.bfloat16) + _nbytes((1, F), jnp.float32)
              + 3 * _nbytes((1, D), jnp.float32))
    y = pl.pallas_call(
        _ff_block_kernel,
        grid=(R // tr,),
        in_specs=[
            pl.BlockSpec((tr, D), lambda r: (r, 0)),
            pl.BlockSpec((1, D), lambda r: (0, 0)),
            pl.BlockSpec((1, D), lambda r: (0, 0)),
            pl.BlockSpec((D, F), lambda r: (0, 0)),
            pl.BlockSpec((1, F), lambda r: (0, 0)),
            pl.BlockSpec((F, D), lambda r: (0, 0)),
            pl.BlockSpec((1, D), lambda r: (0, 0)),
        ],
        out_specs=pl.BlockSpec((tr, D), lambda r: (r, 0)),
        out_shape=jax.ShapeDtypeStruct((R, D), jnp.float32),
        compiler_params=pltpu.CompilerParams(
            dimension_semantics=("parallel",),
            vmem_limit_bytes=_vmem_limit(blocks)),
    )(xr, g.reshape(1, D).astype(jnp.float32), b.reshape(1, D).astype(jnp.float32),
      w1b, b1.reshape(1, F).astype(jnp.float32), w2b, b2.reshape(1, D).astype(jnp.float32))
    return y.reshape(B, N, D)


# ----------------------------------------------------------------------------
# Relative position bias (bucket based) — tiny integer math, plain JAX glue,
# computed once per forward (layer / head / batch invariant).
# ----------------------------------------------------------------------------
def rel_pos_values(N, emb_weight, num_buckets=32, max_distance=128):
    ctx = jnp.arange(N)[:, None]
    mem = jnp.arange(N)[None, :]
    rel = mem - ctx
    half = num_buckets // 2
    sign_offset = (rel < 0).astype(jnp.int32) * half
    dist = jnp.abs(rel)
    is_small = dist < half
    large = jnp.clip(dist.astype(jnp.float32), half, max_distance)
    log_range = math.log(max_distance / half + 1e-8)
    large_bucket = (jnp.log(large / half + 1e-8) / log_range * (half - 1)).astype(jnp.int32) + half
    bucket = jnp.where(is_small, dist, large_bucket)
    rb = jnp.clip(bucket + sign_offset, 0, num_buckets - 1)
    return emb_weight[rb, 0]  # [N, N]


# ----------------------------------------------------------------------------
# Parameter initialization (deterministic, shape-consistent with the module).
# ----------------------------------------------------------------------------
def _xavier(key, fan_in, fan_out):
    lim = math.sqrt(6.0 / (fan_in + fan_out))
    # stored as [in, out] so kernels compute x @ W directly
    return jax.random.uniform(key, (fan_in, fan_out), jnp.float32, -lim, lim)


def init_params(key):
    d_model, d_emb, dim_ff = CFG["d_model"], CFG["d_emb"], CFG["dim_ff"]
    ks = iter(jax.random.split(key, 64))
    p = {
        "input_proj_w": _xavier(next(ks), d_emb, d_model), "input_proj_b": jnp.zeros(d_model),
        "plddt_w": _xavier(next(ks), 1, d_model), "plddt_b": jnp.zeros(d_model),
        "centroid_w": _xavier(next(ks), 3, d_model), "centroid_b": jnp.zeros(d_model),
        "orient_w": _xavier(next(ks), 3, d_model), "orient_b": jnp.zeros(d_model),
        "sidechain_w": _xavier(next(ks), 3, d_model), "sidechain_b": jnp.zeros(d_model),
        "fusion_w": _xavier(next(ks), 5 * d_model, d_model), "fusion_b": jnp.zeros(d_model),
        "pairwise_w": _xavier(next(ks), 5, 1), "pairwise_b": jnp.zeros(1),
        "pos_encoding": jax.random.normal(next(ks), (1, CFG["max_len"], d_model)) * 0.01,
        "cls_token": jax.random.normal(next(ks), (1, 1, d_model)) * 0.01,
        "rel_emb": jax.random.normal(next(ks), (CFG["num_buckets"], 1)),  # nn.Embedding N(0,1)
        "norm_g": jnp.ones(d_model), "norm_b": jnp.zeros(d_model),
        "go_w": _xavier(next(ks), d_model, CFG["num_go_terms"]),
        "go_b": jnp.zeros(CFG["num_go_terms"]),
    }
    layers = []
    for _ in range(CFG["num_layers"]):
        lim_in = math.sqrt(6.0 / (d_model + 3 * d_model))  # xavier over [3d, d] in_proj_weight
        layers.append({
            "ln1_g": jnp.ones(d_model), "ln1_b": jnp.zeros(d_model),
            "ln2_g": jnp.ones(d_model), "ln2_b": jnp.zeros(d_model),
            "in_proj_w": jax.random.uniform(next(ks), (d_model, 3 * d_model),
                                            jnp.float32, -lim_in, lim_in),
            "in_proj_b": jnp.zeros(3 * d_model),
            "out_proj_w": _xavier(next(ks), d_model, d_model), "out_proj_b": jnp.zeros(d_model),
            "ff1_w": _xavier(next(ks), d_model, dim_ff), "ff1_b": jnp.zeros(dim_ff),
            "ff2_w": _xavier(next(ks), dim_ff, d_model), "ff2_b": jnp.zeros(d_model),
        })
    p["layers"] = layers
    return p


# ----------------------------------------------------------------------------
# Forward pass (mirrors ProteinFunctionModel.forward, eval mode).
# ----------------------------------------------------------------------------
def forward(params, seq_embed, attn_mask=None, pae=None, plddt=None, centroid=None,
            orientation_vectors=None, side_chain_vectors=None,
            euclidean_distances=None, edge_vectors=None, q_tile=None):
    B, L, _ = seq_embed.shape
    D = CFG["d_model"]
    H = CFG["n_heads"]
    dh = D // H
    N = L + 1

    # ---- fused front-end: fold 5 per-residue projections + fusion into ONE matmul
    # fused = concat_k(in_k @ W_k + b_k) @ Wf + bf
    #       = concat_k(in_k) @ vstack_k(W_k @ Wf_k) + (sum_k b_k @ Wf_k + bf)
    feats = [
        (seq_embed, params["input_proj_w"], params["input_proj_b"]),
        (None if plddt is None else plddt[..., None], params["plddt_w"], params["plddt_b"]),
        (centroid, params["centroid_w"], params["centroid_b"]),
        (orientation_vectors, params["orient_w"], params["orient_b"]),
        (side_chain_vectors, params["sidechain_w"], params["sidechain_b"]),
    ]
    w_blocks, raw = [], []
    b_comb = params["fusion_b"]
    for k_idx, (inp, wk, bk) in enumerate(feats):
        if inp is None:
            continue  # missing feature contributes exactly zero (matches torch.zeros path)
        wf_k = params["fusion_w"][k_idx * D:(k_idx + 1) * D, :]
        w_blocks.append(wk @ wf_k)
        b_comb = b_comb + bk @ wf_k
        raw.append(inp)
    w_comb = jnp.concatenate(w_blocks, axis=0).astype(jnp.bfloat16)   # bf16 MXU weight
    feat = jnp.concatenate(raw, axis=-1)                              # [B, L, K_total]

    if L <= params["pos_encoding"].shape[1]:
        pos = params["pos_encoding"][0, :L, :]
    else:
        pos = jnp.zeros((L, D), jnp.float32)   # torch: no positional add past max_len

    x = frontend_proj(feat, w_comb, b_comb, pos)          # [B, L, D] f32
    cls = jnp.broadcast_to(params["cls_token"], (B, 1, D)).astype(jnp.float32)
    x = jnp.concatenate([cls, x], axis=1)                 # [B, N, D]

    # ---- bias streams (composed in-kernel; no [B,N,N] f32 combined bias in HBM)
    rp = rel_pos_values(N, params["rel_emb"], num_buckets=CFG["num_buckets"],
                        max_distance=CFG["max_distance"]).astype(jnp.float32)  # [N, N]

    if euclidean_distances is not None and pae is not None and edge_vectors is not None:
        w6 = jnp.concatenate([params["pairwise_w"][:, 0], params["pairwise_b"]]).astype(jnp.float32)
        pair = pairwise_scalar(w6, euclidean_distances, pae,
                               edge_vectors[..., 0], edge_vectors[..., 1],
                               edge_vectors[..., 2])      # [B, L, L] bf16, lane-dense
        pair = jnp.pad(pair, ((0, 0), (1, 0), (1, 0)))    # zero CLS row/col -> [B, N, N] bf16
    else:
        # TODO(synk): skip the pairwise stream entirely (flagged kernel variant) when absent.
        pair = jnp.zeros((B, N, N), jnp.bfloat16)

    if attn_mask is not None:
        # True = padded => key excluded via large negative additive bias.
        pad_mask = jnp.concatenate([jnp.zeros((B, 1), bool), attn_mask], axis=1)
        mask_add = jnp.where(pad_mask, -1e9, 0.0).astype(jnp.float32)[:, None, :]
    else:
        mask_add = jnp.zeros((B, 1, N), jnp.float32)

    # ---- transformer layers: 2 fused kernels per layer --------------------
    scale = 1.0 / math.sqrt(dh)
    tq = q_tile if q_tile is not None else _pick_tile(N, 128)
    for lp in params["layers"]:
        x = attn_block(x, rp, pair, mask_add, lp["ln1_g"], lp["ln1_b"],
                       lp["in_proj_w"], lp["in_proj_b"],
                       lp["out_proj_w"], lp["out_proj_b"],
                       n_heads=H, scale=scale, tq=tq)
        x = ff_block(x, lp["ln2_g"], lp["ln2_b"], lp["ff1_w"], lp["ff1_b"],
                     lp["ff2_w"], lp["ff2_b"])

    # ---- final LayerNorm + GO head on the CLS rows only: plain XLA (too small
    # for a kernel launch; review item 12).
    cls_repr = x[:, 0, :].astype(jnp.float32)
    mu = jnp.mean(cls_repr, axis=-1, keepdims=True)
    c = cls_repr - mu
    var = jnp.mean(c * c, axis=-1, keepdims=True)
    z = c * jax.lax.rsqrt(var + 1e-5) * params["norm_g"] + params["norm_b"]
    go_logits = z @ params["go_w"] + params["go_b"]
    return go_logits


# ----------------------------------------------------------------------------
if __name__ == "__main__":
    key = jax.random.PRNGKey(0)
    pkey, dkey = jax.random.split(key)
    params = init_params(pkey)

    B, L = 2, 15        # N = 16 -> two q-row tiles of 8 (exercises the (B, q_tiles) grid)
    keys = jax.random.split(dkey, 8)
    seq_embed = jax.random.normal(keys[0], (B, L, CFG["d_emb"]), jnp.float32)
    pae = jax.random.uniform(keys[1], (B, L, L), jnp.float32) * 10.0
    plddt = jax.random.uniform(keys[2], (B, L), jnp.float32)
    centroid = jax.random.normal(keys[3], (B, L, 3), jnp.float32)
    orientation = jax.random.normal(keys[4], (B, L, 3), jnp.float32)
    side_chain = jax.random.normal(keys[5], (B, L, 3), jnp.float32)
    eucl = jax.random.uniform(keys[6], (B, L, L), jnp.float32) * 20.0
    edge_vec = jax.random.normal(keys[7], (B, L, L, 3), jnp.float32)

    fwd = jax.jit(functools.partial(forward, q_tile=8))
    go_logits = fwd(params, seq_embed, attn_mask=None, pae=pae, plddt=plddt,
                    centroid=centroid, orientation_vectors=orientation,
                    side_chain_vectors=side_chain, euclidean_distances=eucl,
                    edge_vectors=edge_vec)
    jax.block_until_ready(go_logits)
    assert go_logits.shape == (B, CFG["num_go_terms"])
    assert bool(jnp.all(jnp.isfinite(go_logits)))
    print("KERNEL_OK")
</pallas_src>

<mosaic_0001>
module attributes {stable_mosaic.version = 11 : i64} {
  func.func @_frontend_kernel(%arg0: i32, %arg1: i32, %arg2: memref<1x15x74xf32, #tpu.memory_space<vmem>>, %arg3: memref<74x32xbf16, #tpu.memory_space<vmem>>, %arg4: memref<1x32xf32, #tpu.memory_space<vmem>>, %arg5: memref<15x32xf32, #tpu.memory_space<vmem>>, %arg6: memref<1x15x32xf32, #tpu.memory_space<vmem>>) attributes {dimension_semantics = [#tpu.dimension_semantics<parallel>, #tpu.dimension_semantics<parallel>], iteration_bounds = array<i64: 2, 1>, scalar_prefetch = 0 : i64, scratch_operands = 0 : i64, tpu.core_type = #tpu.core_type<tc>, window_params = [{transform_indices = @transform_0, window_bounds = array<i64: 1, 15, 74>}, {pipeline_mode = #tpu.pipeline_mode<synchronous>, transform_indices = @transform_1, window_bounds = array<i64: 74, 32>}, {pipeline_mode = #tpu.pipeline_mode<synchronous>, transform_indices = @transform_2, window_bounds = array<i64: 1, 32>}, {transform_indices = @transform_3, window_bounds = array<i64: 15, 32>}, {transform_indices = @transform_4, window_bounds = array<i64: 1, 15, 32>}]} {
    %c0 = arith.constant 0 : index
    %c0_0 = arith.constant 0 : index
    %c0_1 = arith.constant 0 : index
    %0 = vector.load %arg2[%c0, %c0_0, %c0_1] : memref<1x15x74xf32, #tpu.memory_space<vmem>>, vector<1x15x74xf32>
    %1 = vector.shape_cast %0 : vector<1x15x74xf32> to vector<15x74xf32>
    %2 = arith.truncf %1 : vector<15x74xf32> to vector<15x74xbf16>
    %c0_2 = arith.constant 0 : index
    %c0_3 = arith.constant 0 : index
    %3 = vector.load %arg3[%c0_2, %c0_3] : memref<74x32xbf16, #tpu.memory_space<vmem>>, vector<74x32xbf16>
    %cst = arith.constant dense<0.000000e+00> : vector<15x32xf32>
    %4 = tpu.matmul %2, %3, %cst {dimension_numbers = #tpu.dot_dimension_numbers<[1], [0], [0], [1], [0, 0, 1, 1], [], []>} : vector<15x74xbf16>, vector<74x32xbf16>, vector<15x32xf32> -> vector<15x32xf32>
    %c0_4 = arith.constant 0 : index
    %c0_5 = arith.constant 0 : index
    %5 = vector.load %arg4[%c0_4, %c0_5] : memref<1x32xf32, #tpu.memory_space<vmem>>, vector<1x32xf32>
    %6 = vector.broadcast %5 : vector<1x32xf32> to vector<15x32xf32>
    %7 = arith.addf %4, %6 : vector<15x32xf32>
    %c0_6 = arith.constant 0 : index
    %c0_7 = arith.constant 0 : index
    %8 = vector.load %arg5[%c0_6, %c0_7] : memref<15x32xf32, #tpu.memory_space<vmem>>, vector<15x32xf32>
    %9 = arith.addf %7, %8 : vector<15x32xf32>
    %c0_8 = arith.constant 0 : index
    %c0_9 = arith.constant 0 : index
    %c0_10 = arith.constant 0 : index
    %10 = vector.load %arg6[%c0_8, %c0_9, %c0_10] : memref<1x15x32xf32, #tpu.memory_space<vmem>>, vector<1x15x32xf32>
    %11 = vector.shape_cast %10 : vector<1x15x32xf32> to vector<15x32xf32>
    %12 = vector.shape_cast %9 : vector<15x32xf32> to vector<1x15x32xf32>
    tpu.vector_store %arg6[%c0_8, %c0_9, %c0_10], %12 {strides = array<i32>} : memref<1x15x32xf32, #tpu.memory_space<vmem>>, vector<1x15x32xf32>,
    return
  }
  func.func @transform_0(%arg0: i32, %arg1: i32) -> (i32, i32, i32) {
    %c0_i32 = arith.constant 0 : i32
    %c0_i32_0 = arith.constant 0 : i32
    return %arg0, %arg1, %c0_i32 : i32, i32, i32
  }
  func.func @transform_1(%arg0: i32, %arg1: i32) -> (i32, i32) {
    %c0_i32 = arith.constant 0 : i32
    %c0_i32_0 = arith.constant 0 : i32
    %c0_i32_1 = arith.constant 0 : i32
    return %c0_i32, %c0_i32_0 : i32, i32
  }
  func.func @transform_2(%arg0: i32, %arg1: i32) -> (i32, i32) {
    %c0_i32 = arith.constant 0 : i32
    %c0_i32_0 = arith.constant 0 : i32
    %c0_i32_1 = arith.constant 0 : i32
    return %c0_i32, %c0_i32_0 : i32, i32
  }
  func.func @transform_3(%arg0: i32, %arg1: i32) -> (i32, i32) {
    %c0_i32 = arith.constant 0 : i32
    %c0_i32_0 = arith.constant 0 : i32
    return %arg1, %c0_i32 : i32, i32
  }
  func.func @transform_4(%arg0: i32, %arg1: i32) -> (i32, i32, i32) {
    %c0_i32 = arith.constant 0 : i32
    %c0_i32_0 = arith.constant 0 : i32
    return %arg0, %arg1, %c0_i32 : i32, i32, i32
  }
}

module attributes {stable_mosaic.version = 11 : i64} {
  func.func @_pairwise_kernel(%arg0: i32, %arg1: i32, %arg2: memref<6xf32, #tpu.memory_space<smem>>, %arg3: memref<1x15x15xf32, #tpu.memory_space<vmem>>, %arg4: memref<1x15x15xf32, #tpu.memory_space<vmem>>, %arg5: memref<1x15x15xf32, #tpu.memory_space<vmem>>, %arg6: memref<1x15x15xf32, #tpu.memory_space<vmem>>, %arg7: memref<1x15x15xf32, #tpu.memory_space<vmem>>, %arg8: memref<1x15x15xbf16, #tpu.memory_space<vmem>>) attributes {dimension_semantics = [#tpu.dimension_semantics<parallel>, #tpu.dimension_semantics<parallel>], iteration_bounds = array<i64: 2, 1>, scalar_prefetch = 0 : i64, scratch_operands = 0 : i64, tpu.core_type = #tpu.core_type<tc>, window_params = [{transform_indices = @transform_0, window_bounds = array<i64: 6>}, {transform_indices = @transform_1, window_bounds = array<i64: 1, 15, 15>}, {transform_indices = @transform_2, window_bounds = array<i64: 1, 15, 15>}, {transform_indices = @transform_3, window_bounds = array<i64: 1, 15, 15>}, {transform_indices = @transform_4, window_bounds = array<i64: 1, 15, 15>}, {transform_indices = @transform_5, window_bounds = array<i64: 1, 15, 15>}, {transform_indices = @transform_6, window_bounds = array<i64: 1, 15, 15>}]} {
    %c0 = arith.constant 0 : index
    %c0_0 = arith.constant 0 : index
    %c0_1 = arith.constant 0 : index
    %0 = vector.load %arg3[%c0, %c0_0, %c0_1] : memref<1x15x15xf32, #tpu.memory_space<vmem>>, vector<1x15x15xf32>
    %1 = vector.shape_cast %0 : vector<1x15x15xf32> to vector<15x15xf32>
    %c0_2 = arith.constant 0 : index
    %2 = memref.load %arg2[%c0_2] : memref<6xf32, #tpu.memory_space<smem>>
    %3 = vector.broadcast %2 : f32 to vector<15x15xf32>
    %4 = arith.mulf %1, %3 : vector<15x15xf32>
    %c0_3 = arith.constant 0 : index
    %c0_4 = arith.constant 0 : index
    %c0_5 = arith.constant 0 : index
    %5 = vector.load %arg4[%c0_3, %c0_4, %c0_5] : memref<1x15x15xf32, #tpu.memory_space<vmem>>, vector<1x15x15xf32>
    %6 = vector.shape_cast %5 : vector<1x15x15xf32> to vector<15x15xf32>
    %c1 = arith.constant 1 : index
    %7 = memref.load %arg2[%c1] : memref<6xf32, #tpu.memory_space<smem>>
    %8 = vector.broadcast %7 : f32 to vector<15x15xf32>
    %9 = arith.mulf %6, %8 : vector<15x15xf32>
    %10 = arith.addf %4, %9 : vector<15x15xf32>
    %c0_6 = arith.constant 0 : index
    %c0_7 = arith.constant 0 : index
    %c0_8 = arith.constant 0 : index
    %11 = vector.load %arg5[%c0_6, %c0_7, %c0_8] : memref<1x15x15xf32, #tpu.memory_space<vmem>>, vector<1x15x15xf32>
    %12 = vector.shape_cast %11 : vector<1x15x15xf32> to vector<15x15xf32>
    %c2 = arith.constant 2 : index
    %13 = memref.load %arg2[%c2] : memref<6xf32, #tpu.memory_space<smem>>
    %14 = vector.broadcast %13 : f32 to vector<15x15xf32>
    %15 = arith.mulf %12, %14 : vector<15x15xf32>
    %16 = arith.addf %10, %15 : vector<15x15xf32>
    %c0_9 = arith.constant 0 : index
    %c0_10 = arith.constant 0 : index
    %c0_11 = arith.constant 0 : index
    %17 = vector.load %arg6[%c0_9, %c0_10, %c0_11] : memref<1x15x15xf32, #tpu.memory_space<vmem>>, vector<1x15x15xf32>
    %18 = vector.shape_cast %17 : vector<1x15x15xf32> to vector<15x15xf32>
    %c3 = arith.constant 3 : index
    %19 = memref.load %arg2[%c3] : memref<6xf32, #tpu.memory_space<smem>>
    %20 = vector.broadcast %19 : f32 to vector<15x15xf32>
    %21 = arith.mulf %18, %20 : vector<15x15xf32>
    %22 = arith.addf %16, %21 : vector<15x15xf32>
    %c0_12 = arith.constant 0 : index
    %c0_13 = arith.constant 0 : index
    %c0_14 = arith.constant 0 : index
    %23 = vector.load %arg7[%c0_12, %c0_13, %c0_14] : memref<1x15x15xf32, #tpu.memory_space<vmem>>, vector<1x15x15xf32>
    %24 = vector.shape_cast %23 : vector<1x15x15xf32> to vector<15x15xf32>
    %c4 = arith.constant 4 : index
    %25 = memref.load %arg2[%c4] : memref<6xf32, #tpu.memory_space<smem>>
    %26 = vector.broadcast %25 : f32 to vector<15x15xf32>
    %27 = arith.mulf %24, %26 : vector<15x15xf32>
    %28 = arith.addf %22, %27 : vector<15x15xf32>
    %c5 = arith.constant 5 : index
    %29 = memref.load %arg2[%c5] : memref<6xf32, #tpu.memory_space<smem>>
    %30 = vector.broadcast %29 : f32 to vector<15x15xf32>
    %31 = arith.addf %28, %30 : vector<15x15xf32>
    %32 = arith.truncf %31 : vector<15x15xf32> to vector<15x15xbf16>
    %c0_15 = arith.constant 0 : index
    %c0_16 = arith.constant 0 : index
    %c0_17 = arith.constant 0 : index
    %33 = vector.load %arg8[%c0_15, %c0_16, %c0_17] : memref<1x15x15xbf16, #tpu.memory_space<vmem>>, vector<1x15x15xbf16>
    %34 = vector.shape_cast %33 : vector<1x15x15xbf16> to vector<15x15xbf16>
    %35 = vector.shape_cast %32 : vector<15x15xbf16> to vector<1x15x15xbf16>
    tpu.vector_store %arg8[%c0_15, %c0_16, %c0_17], %35 {strides = array<i32>} : memref<1x15x15xbf16, #tpu.memory_space<vmem>>, vector<1x15x15xbf16>,
    return
  }
  func.func @transform_0(%arg0: i32, %arg1: i32) -> i32 {
    %c0_i32 = arith.constant 0 : i32
    %c0_i32_0 = arith.constant 0 : i32
    return %c0_i32 : i32
  }
  func.func @transform_1(%arg0: i32, %arg1: i32) -> (i32, i32, i32) {
    %c0_i32 = arith.constant 0 : i32
    %c0_i32_0 = arith.constant 0 : i32
    return %arg0, %arg1, %c0_i32 : i32, i32, i32
  }
  func.func @transform_2(%arg0: i32, %arg1: i32) -> (i32, i32, i32) {
    %c0_i32 = arith.constant 0 : i32
    %c0_i32_0 = arith.constant 0 : i32
    return %arg0, %arg1, %c0_i32 : i32, i32, i32
  }
  func.func @transform_3(%arg0: i32, %arg1: i32) -> (i32, i32, i32) {
    %c0_i32 = arith.constant 0 : i32
    %c0_i32_0 = arith.constant 0 : i32
    return %arg0, %arg1, %c0_i32 : i32, i32, i32
  }
  func.func @transform_4(%arg0: i32, %arg1: i32) -> (i32, i32, i32) {
    %c0_i32 = arith.constant 0 : i32
    %c0_i32_0 = arith.constant 0 : i32
    return %arg0, %arg1, %c0_i32 : i32, i32, i32
  }
  func.func @transform_5(%arg0: i32, %arg1: i32) -> (i32, i32, i32) {
    %c0_i32 = arith.constant 0 : i32
    %c0_i32_0 = arith.constant 0 : i32
    return %arg0, %arg1, %c0_i32 : i32, i32, i32
  }
  func.func @transform_6(%arg0: i32, %arg1: i32) -> (i32, i32, i32) {
    %c0_i32 = arith.constant 0 : i32
    %c0_i32_0 = arith.constant 0 : i32
    return %arg0, %arg1, %c0_i32 : i32, i32, i32
  }
}

module attributes {stable_mosaic.version = 11 : i64} {
  func.func @_attn_block_kernel(%arg0: i32, %arg1: i32, %arg2: memref<1x8x32xf32, #tpu.memory_space<vmem>>, %arg3: memref<1x16x32xf32, #tpu.memory_space<vmem>>, %arg4: memref<8x16xf32, #tpu.memory_space<vmem>>, %arg5: memref<1x8x16xbf16, #tpu.memory_space<vmem>>, %arg6: memref<1x1x16xf32, #tpu.memory_space<vmem>>, %arg7: memref<1x32xf32, #tpu.memory_space<vmem>>, %arg8: memref<1x32xf32, #tpu.memory_space<vmem>>, %arg9: memref<32x32xbf16, #tpu.memory_space<vmem>>, %arg10: memref<32x32xbf16, #tpu.memory_space<vmem>>, %arg11: memref<32x32xbf16, #tpu.memory_space<vmem>>, %arg12: memref<1x32xf32, #tpu.memory_space<vmem>>, %arg13: memref<1x32xf32, #tpu.memory_space<vmem>>, %arg14: memref<1x32xf32, #tpu.memory_space<vmem>>, %arg15: memref<32x32xbf16, #tpu.memory_space<vmem>>, %arg16: memref<1x32xf32, #tpu.memory_space<vmem>>, %arg17: memref<1x8x32xf32, #tpu.memory_space<vmem>>, %arg18: memref<8x32xf32, #tpu.memory_space<vmem>>) attributes {dimension_semantics = [#tpu.dimension_semantics<parallel>, #tpu.dimension_semantics<parallel>], iteration_bounds = array<i64: 2, 2>, scalar_prefetch = 0 : i64, scratch_operands = 1 : i64, tpu.core_type = #tpu.core_type<tc>, window_params = [{transform_indices = @transform_0, window_bounds = array<i64: 1, 8, 32>}, {transform_indices = @transform_1, window_bounds = array<i64: 1, 16, 32>}, {transform_indices = @transform_2, window_bounds = array<i64: 8, 16>}, {transform_indices = @transform_3, window_bounds = array<i64: 1, 8, 16>}, {transform_indices = @transform_4, window_bounds = array<i64: 1, 1, 16>}, {pipeline_mode = #tpu.pipeline_mode<synchronous>, transform_indices = @transform_5, window_bounds = array<i64: 1, 32>}, {pipeline_mode = #tpu.pipeline_mode<synchronous>, transform_indices = @transform_6, window_bounds = array<i64: 1, 32>}, {pipeline_mode = #tpu.pipeline_mode<synchronous>, transform_indices = @transform_7, window_bounds = array<i64: 32, 32>}, {pipeline_mode = #tpu.pipeline_mode<synchronous>, transform_indices = @transform_8, window_bounds = array<i64: 32, 32>}, {pipeline_mode = #tpu.pipeline_mode<synchronous>, transform_indices = @transform_9, window_bounds = array<i64: 32, 32>}, {pipeline_mode = #tpu.pipeline_mode<synchronous>, transform_indices = @transform_10, window_bounds = array<i64: 1, 32>}, {pipeline_mode = #tpu.pipeline_mode<synchronous>, transform_indices = @transform_11, window_bounds = array<i64: 1, 32>}, {pipeline_mode = #tpu.pipeline_mode<synchronous>, transform_indices = @transform_12, window_bounds = array<i64: 1, 32>}, {pipeline_mode = #tpu.pipeline_mode<synchronous>, transform_indices = @transform_13, window_bounds = array<i64: 32, 32>}, {pipeline_mode = #tpu.pipeline_mode<synchronous>, transform_indices = @transform_14, window_bounds = array<i64: 1, 32>}, {transform_indices = @transform_15, window_bounds = array<i64: 1, 8, 32>}]} {
    %c0 = arith.constant 0 : index
    %c0_0 = arith.constant 0 : index
    %c0_1 = arith.constant 0 : index
    %0 = vector.load %arg2[%c0, %c0_0, %c0_1] : memref<1x8x32xf32, #tpu.memory_space<vmem>>, vector<1x8x32xf32>
    %1 = vector.shape_cast %0 : vector<1x8x32xf32> to vector<8x32xf32>
    %c0_2 = arith.constant 0 : index
    %c0_3 = arith.constant 0 : index
    %c0_4 = arith.constant 0 : index
    %2 = vector.load %arg3[%c0_2, %c0_3, %c0_4] : memref<1x16x32xf32, #tpu.memory_space<vmem>>, vector<1x16x32xf32>
    %3 = vector.shape_cast %2 : vector<1x16x32xf32> to vector<16x32xf32>
    %c0_5 = arith.constant 0 : index
    %c0_6 = arith.constant 0 : index
    %4 = vector.load %arg7[%c0_5, %c0_6] : memref<1x32xf32, #tpu.memory_space<vmem>>, vector<1x32xf32>
    %c0_7 = arith.constant 0 : index
    %c0_8 = arith.constant 0 : index
    %5 = vector.load %arg8[%c0_7, %c0_8] : memref<1x32xf32, #tpu.memory_space<vmem>>, vector<1x32xf32>
    %cst = arith.constant dense<0.000000e+00> : vector<8xf32>
    %6 = vector.multi_reduction <add>, %1, %cst [1] : vector<8x32xf32> to vector<8xf32>
    %7 = vector.shape_cast %6 : vector<8xf32> to vector<8x1xf32>
    %cst_9 = arith.constant 3.200000e+01 : f32
    %8 = vector.broadcast %cst_9 : f32 to vector<8x1xf32>
    %9 = arith.divf %7, %8 : vector<8x1xf32>
    %10 = vector.broadcast %9 : vector<8x1xf32> to vector<8x32xf32>
    %11 = arith.subf %1, %10 : vector<8x32xf32>
    %12 = arith.mulf %11, %11 : vector<8x32xf32>
    %cst_10 = arith.constant dense<0.000000e+00> : vector<8xf32>
    %13 = vector.multi_reduction <add>, %12, %cst_10 [1] : vector<8x32xf32> to vector<8xf32>
    %14 = vector.shape_cast %13 : vector<8xf32> to vector<8x1xf32>
    %cst_11 = arith.constant 3.200000e+01 : f32
    %15 = vector.broadcast %cst_11 : f32 to vector<8x1xf32>
    %16 = arith.divf %14, %15 : vector<8x1xf32>
    %cst_12 = arith.constant 9.99999974E-6 : f32
    %17 = vector.broadcast %cst_12 : f32 to vector<8x1xf32>
    %18 = arith.addf %16, %17 : vector<8x1xf32>
    %19 = math.rsqrt %18 : vector<8x1xf32>
    %20 = vector.broadcast %19 : vector<8x1xf32> to vector<8x32xf32>
    %21 = arith.mulf %11, %20 : vector<8x32xf32>
    %22 = vector.broadcast %4 : vector<1x32xf32> to vector<8x32xf32>
    %23 = arith.mulf %21, %22 : vector<8x32xf32>
    %24 = vector.broadcast %5 : vector<1x32xf32> to vector<8x32xf32>
    %25 = arith.addf %23, %24 : vector<8x32xf32>
    %26 = arith.truncf %25 : vector<8x32xf32> to vector<8x32xbf16>
    %c0_13 = arith.constant 0 : index
    %c0_14 = arith.constant 0 : index
    %27 = vector.load %arg7[%c0_13, %c0_14] : memref<1x32xf32, #tpu.memory_space<vmem>>, vector<1x32xf32>
    %c0_15 = arith.constant 0 : index
    %c0_16 = arith.constant 0 : index
    %28 = vector.load %arg8[%c0_15, %c0_16] : memref<1x32xf32, #tpu.memory_space<vmem>>, vector<1x32xf32>
    %cst_17 = arith.constant dense<0.000000e+00> : vector<16xf32>
    %29 = vector.multi_reduction <add>, %3, %cst_17 [1] : vector<16x32xf32> to vector<16xf32>
    %30 = vector.shape_cast %29 : vector<16xf32> to vector<16x1xf32>
    %cst_18 = arith.constant 3.200000e+01 : f32
    %31 = vector.broadcast %cst_18 : f32 to vector<16x1xf32>
    %32 = arith.divf %30, %31 : vector<16x1xf32>
    %33 = vector.broadcast %32 : vector<16x1xf32> to vector<16x32xf32>
    %34 = arith.subf %3, %33 : vector<16x32xf32>
    %35 = arith.mulf %34, %34 : vector<16x32xf32>
    %cst_19 = arith.constant dense<0.000000e+00> : vector<16xf32>
    %36 = vector.multi_reduction <add>, %35, %cst_19 [1] : vector<16x32xf32> to vector<16xf32>
    %37 = vector.shape_cast %36 : vector<16xf32> to vector<16x1xf32>
    %cst_20 = arith.constant 3.200000e+01 : f32
    %38 = vector.broadcast %cst_20 : f32 to vector<16x1xf32>
    %39 = arith.divf %37, %38 : vector<16x1xf32>
    %cst_21 = arith.constant 9.99999974E-6 : f32
    %40 = vector.broadcast %cst_21 : f32 to vector<16x1xf32>
    %41 = arith.addf %39, %40 : vector<16x1xf32>
    %42 = math.rsqrt %41 : vector<16x1xf32>
    %43 = vector.broadcast %42 : vector<16x1xf32> to vector<16x32xf32>
    %44 = arith.mulf %34, %43 : vector<16x32xf32>
    %45 = vector.broadcast %27 : vector<1x32xf32> to vector<16x32xf32>
    %46 = arith.mulf %44, %45 : vector<16x32xf32>
    %47 = vector.broadcast %28 : vector<1x32xf32> to vector<16x32xf32>
    %48 = arith.addf %46, %47 : vector<16x32xf32>
    %49 = arith.truncf %48 : vector<16x32xf32> to vector<16x32xbf16>
    %c0_22 = arith.constant 0 : index
    %c0_23 = arith.constant 0 : index
    %50 = vector.load %arg9[%c0_22, %c0_23] : memref<32x32xbf16, #tpu.memory_space<vmem>>, vector<32x32xbf16>
    %cst_24 = arith.constant dense<0.000000e+00> : vector<8x32xf32>
    %51 = tpu.matmul %26, %50, %cst_24 {dimension_numbers = #tpu.dot_dimension_numbers<[1], [0], [0], [1], [0, 0, 1, 1], [], []>} : vector<8x32xbf16>, vector<32x32xbf16>, vector<8x32xf32> -> vector<8x32xf32>
    %c0_25 = arith.constant 0 : index
    %c0_26 = arith.constant 0 : index
    %52 = vector.load %arg12[%c0_25, %c0_26] : memref<1x32xf32, #tpu.memory_space<vmem>>, vector<1x32xf32>
    %53 = vector.broadcast %52 : vector<1x32xf32> to vector<8x32xf32>
    %54 = arith.addf %51, %53 : vector<8x32xf32>
    %c0_27 = arith.constant 0 : index
    %c0_28 = arith.constant 0 : index
    %55 = vector.load %arg10[%c0_27, %c0_28] : memref<32x32xbf16, #tpu.memory_space<vmem>>, vector<32x32xbf16>
    %cst_29 = arith.constant dense<0.000000e+00> : vector<16x32xf32>
    %56 = tpu.matmul %49, %55, %cst_29 {dimension_numbers = #tpu.dot_dimension_numbers<[1], [0], [0], [1], [0, 0, 1, 1], [], []>} : vector<16x32xbf16>, vector<32x32xbf16>, vector<16x32xf32> -> vector<16x32xf32>
    %c0_30 = arith.constant 0 : index
    %c0_31 = arith.constant 0 : index
    %57 = vector.load %arg13[%c0_30, %c0_31] : memref<1x32xf32, #tpu.memory_space<vmem>>, vector<1x32xf32>
    %58 = vector.broadcast %57 : vector<1x32xf32> to vector<16x32xf32>
    %59 = arith.addf %56, %58 : vector<16x32xf32>
    %c0_32 = arith.constant 0 : index
    %c0_33 = arith.constant 0 : index
    %60 = vector.load %arg11[%c0_32, %c0_33] : memref<32x32xbf16, #tpu.memory_space<vmem>>, vector<32x32xbf16>
    %cst_34 = arith.constant dense<0.000000e+00> : vector<16x32xf32>
    %61 = tpu.matmul %49, %60, %cst_34 {dimension_numbers = #tpu.dot_dimension_numbers<[1], [0], [0], [1], [0, 0, 1, 1], [], []>} : vector<16x32xbf16>, vector<32x32xbf16>, vector<16x32xf32> -> vector<16x32xf32>
    %c0_35 = arith.constant 0 : index
    %c0_36 = arith.constant 0 : index
    %62 = vector.load %arg14[%c0_35, %c0_36] : memref<1x32xf32, #tpu.memory_space<vmem>>, vector<1x32xf32>
    %63 = vector.broadcast %62 : vector<1x32xf32> to vector<16x32xf32>
    %64 = arith.addf %61, %63 : vector<16x32xf32>
    %c0_37 = arith.constant 0 : index
    %c0_38 = arith.constant 0 : index
    %65 = vector.load %arg4[%c0_37, %c0_38] : memref<8x16xf32, #tpu.memory_space<vmem>>, vector<8x16xf32>
    %c0_39 = arith.constant 0 : index
    %c0_40 = arith.constant 0 : index
    %c0_41 = arith.constant 0 : index
    %66 = vector.load %arg5[%c0_39, %c0_40, %c0_41] : memref<1x8x16xbf16, #tpu.memory_space<vmem>>, vector<1x8x16xbf16>
    %67 = vector.shape_cast %66 : vector<1x8x16xbf16> to vector<8x16xbf16>
    %68 = arith.extf %67 : vector<8x16xbf16> to vector<8x16xf32>
    %69 = arith.addf %65, %68 : vector<8x16xf32>
    %c0_42 = arith.constant 0 : index
    %c0_43 = arith.constant 0 : index
    %c0_44 = arith.constant 0 : index
    %70 = vector.load %arg6[%c0_42, %c0_43, %c0_44] : memref<1x1x16xf32, #tpu.memory_space<vmem>>, vector<1x1x16xf32>
    %71 = vector.shape_cast %70 : vector<1x1x16xf32> to vector<1x16xf32>
    %72 = vector.broadcast %71 : vector<1x16xf32> to vector<8x16xf32>
    %73 = arith.addf %69, %72 : vector<8x16xf32>
    %74 = vector.extract_strided_slice %54 {offsets = [0, 0], sizes = [8, 8], strides = [1, 1]} : vector<8x32xf32> to vector<8x8xf32>
    %75 = arith.truncf %74 : vector<8x8xf32> to vector<8x8xbf16>
    %76 = vector.extract_strided_slice %59 {offsets = [0, 0], sizes = [16, 8], strides = [1, 1]} : vector<16x32xf32> to vector<16x8xf32>
    %77 = arith.truncf %76 : vector<16x8xf32> to vector<16x8xbf16>
    %78 = vector.extract_strided_slice %64 {offsets = [0, 0], sizes = [16, 8], strides = [1, 1]} : vector<16x32xf32> to vector<16x8xf32>
    %79 = arith.truncf %78 : vector<16x8xf32> to vector<16x8xbf16>
    %cst_45 = arith.constant dense<0.000000e+00> : vector<8x16xf32>
    %80 = tpu.matmul %75, %77, %cst_45 {dimension_numbers = #tpu.dot_dimension_numbers<[1], [1], [0], [0], [0, 0, 1, 0], [], []>} : vector<8x8xbf16>, vector<16x8xbf16>, vector<8x16xf32> -> vector<8x16xf32>
    %cst_46 = arith.constant 0.353553385 : f32
    %81 = vector.broadcast %cst_46 : f32 to vector<8x16xf32>
    %82 = arith.mulf %80, %81 : vector<8x16xf32>
    %83 = arith.addf %82, %73 : vector<8x16xf32>
    %cst_47 = arith.constant dense<0xFF800000> : vector<8xf32>
    %84 = vector.multi_reduction <maximumf>, %83, %cst_47 [1] : vector<8x16xf32> to vector<8xf32>
    %85 = vector.shape_cast %84 : vector<8xf32> to vector<8x1xf32>
    %86 = vector.broadcast %85 : vector<8x1xf32> to vector<8x16xf32>
    %87 = arith.subf %83, %86 : vector<8x16xf32>
    %88 = math.exp %87 : vector<8x16xf32>
    %cst_48 = arith.constant dense<0.000000e+00> : vector<8xf32>
    %89 = vector.multi_reduction <add>, %88, %cst_48 [1] : vector<8x16xf32> to vector<8xf32>
    %90 = vector.shape_cast %89 : vector<8xf32> to vector<8x1xf32>
    %91 = tpu.reciprocal %90 {approx = true} : vector<8x1xf32> -> vector<8x1xf32>
    %92 = vector.broadcast %91 : vector<8x1xf32> to vector<8x16xf32>
    %93 = arith.mulf %88, %92 : vector<8x16xf32>
    %94 = arith.truncf %93 : vector<8x16xf32> to vector<8x16xbf16>
    %cst_49 = arith.constant dense<0.000000e+00> : vector<8x8xf32>
    %95 = tpu.matmul %94, %79, %cst_49 {dimension_numbers = #tpu.dot_dimension_numbers<[1], [0], [0], [1], [0, 0, 1, 1], [], []>} : vector<8x16xbf16>, vector<16x8xbf16>, vector<8x8xf32> -> vector<8x8xf32>
    %c0_50 = arith.constant 0 : index
    %c0_51 = arith.constant 0 : index
    %96 = vector.load %arg18[%c0_50, %c0_51] : memref<8x32xf32, #tpu.memory_space<vmem>>, vector<8x8xf32>
    tpu.vector_store %arg18[%c0_50, %c0_51], %95 {strides = array<i32>} : memref<8x32xf32, #tpu.memory_space<vmem>>, vector<8x8xf32>,
    %97 = vector.extract_strided_slice %54 {offsets = [0, 8], sizes = [8, 8], strides = [1, 1]} : vector<8x32xf32> to vector<8x8xf32>
    %98 = arith.truncf %97 : vector<8x8xf32> to vector<8x8xbf16>
    %99 = vector.extract_strided_slice %59 {offsets = [0, 8], sizes = [16, 8], strides = [1, 1]} : vector<16x32xf32> to vector<16x8xf32>
    %100 = arith.truncf %99 : vector<16x8xf32> to vector<16x8xbf16>
    %101 = vector.extract_strided_slice %64 {offsets = [0, 8], sizes = [16, 8], strides = [1, 1]} : vector<16x32xf32> to vector<16x8xf32>
    %102 = arith.truncf %101 : vector<16x8xf32> to vector<16x8xbf16>
    %cst_52 = arith.constant dense<0.000000e+00> : vector<8x16xf32>
    %103 = tpu.matmul %98, %100, %cst_52 {dimension_numbers = #tpu.dot_dimension_numbers<[1], [1], [0], [0], [0, 0, 1, 0], [], []>} : vector<8x8xbf16>, vector<16x8xbf16>, vector<8x16xf32> -> vector<8x16xf32>
    %cst_53 = arith.constant 0.353553385 : f32
    %104 = vector.broadcast %cst_53 : f32 to vector<8x16xf32>
    %105 = arith.mulf %103, %104 : vector<8x16xf32>
    %106 = arith.addf %105, %73 : vector<8x16xf32>
    %cst_54 = arith.constant dense<0xFF800000> : vector<8xf32>
    %107 = vector.multi_reduction <maximumf>, %106, %cst_54 [1] : vector<8x16xf32> to vector<8xf32>
    %108 = vector.shape_cast %107 : vector<8xf32> to vector<8x1xf32>
    %109 = vector.broadcast %108 : vector<8x1xf32> to vector<8x16xf32>
    %110 = arith.subf %106, %109 : vector<8x16xf32>
    %111 = math.exp %110 : vector<8x16xf32>
    %cst_55 = arith.constant dense<0.000000e+00> : vector<8xf32>
    %112 = vector.multi_reduction <add>, %111, %cst_55 [1] : vector<8x16xf32> to vector<8xf32>
    %113 = vector.shape_cast %112 : vector<8xf32> to vector<8x1xf32>
    %114 = tpu.reciprocal %113 {approx = true} : vector<8x1xf32> -> vector<8x1xf32>
    %115 = vector.broadcast %114 : vector<8x1xf32> to vector<8x16xf32>
    %116 = arith.mulf %111, %115 : vector<8x16xf32>
    %117 = arith.truncf %116 : vector<8x16xf32> to vector<8x16xbf16>
    %cst_56 = arith.constant dense<0.000000e+00> : vector<8x8xf32>
    %118 = tpu.matmul %117, %102, %cst_56 {dimension_numbers = #tpu.dot_dimension_numbers<[1], [0], [0], [1], [0, 0, 1, 1], [], []>} : vector<8x16xbf16>, vector<16x8xbf16>, vector<8x8xf32> -> vector<8x8xf32>
    %c0_57 = arith.constant 0 : index
    %c8 = arith.constant 8 : index
    %119 = vector.load %arg18[%c0_57, %c8] : memref<8x32xf32, #tpu.memory_space<vmem>>, vector<8x8xf32>
    tpu.vector_store %arg18[%c0_57, %c8], %118 {strides = array<i32>} : memref<8x32xf32, #tpu.memory_space<vmem>>, vector<8x8xf32>,
    %120 = vector.extract_strided_slice %54 {offsets = [0, 16], sizes = [8, 8], strides = [1, 1]} : vector<8x32xf32> to vector<8x8xf32>
    %121 = arith.truncf %120 : vector<8x8xf32> to vector<8x8xbf16>
    %122 = vector.extract_strided_slice %59 {offsets = [0, 16], sizes = [16, 8], strides = [1, 1]} : vector<16x32xf32> to vector<16x8xf32>
    %123 = arith.truncf %122 : vector<16x8xf32> to vector<16x8xbf16>
    %124 = vector.extract_strided_slice %64 {offsets = [0, 16], sizes = [16, 8], strides = [1, 1]} : vector<16x32xf32> to vector<16x8xf32>
    %125 = arith.truncf %124 : vector<16x8xf32> to vector<16x8xbf16>
    %cst_58 = arith.constant dense<0.000000e+00> : vector<8x16xf32>
    %126 = tpu.matmul %121, %123, %cst_58 {dimension_numbers = #tpu.dot_dimension_numbers<[1], [1], [0], [0], [0, 0, 1, 0], [], []>} : vector<8x8xbf16>, vector<16x8xbf16>, vector<8x16xf32> -> vector<8x16xf32>
    %cst_59 = arith.constant 0.353553385 : f32
    %127 = vector.broadcast %cst_59 : f32 to vector<8x16xf32>
    %128 = arith.mulf %126, %127 : vector<8x16xf32>
    %129 = arith.addf %128, %73 : vector<8x16xf32>
    %cst_60 = arith.constant dense<0xFF800000> : vector<8xf32>
    %130 = vector.multi_reduction <maximumf>, %129, %cst_60 [1] : vector<8x16xf32> to vector<8xf32>
    %131 = vector.shape_cast %130 : vector<8xf32> to vector<8x1xf32>
    %132 = vector.broadcast %131 : vector<8x1xf32> to vector<8x16xf32>
    %133 = arith.subf %129, %132 : vector<8x16xf32>
    %134 = math.exp %133 : vector<8x16xf32>
    %cst_61 = arith.constant dense<0.000000e+00> : vector<8xf32>
    %135 = vector.multi_reduction <add>, %134, %cst_61 [1] : vector<8x16xf32> to vector<8xf32>
    %136 = vector.shape_cast %135 : vector<8xf32> to vector<8x1xf32>
    %137 = tpu.reciprocal %136 {approx = true} : vector<8x1xf32> -> vector<8x1xf32>
    %138 = vector.broadcast %137 : vector<8x1xf32> to vector<8x16xf32>
    %139 = arith.mulf %134, %138 : vector<8x16xf32>
    %140 = arith.truncf %139 : vector<8x16xf32> to vector<8x16xbf16>
    %cst_62 = arith.constant dense<0.000000e+00> : vector<8x8xf32>
    %141 = tpu.matmul %140, %125, %cst_62 {dimension_numbers = #tpu.dot_dimension_numbers<[1], [0], [0], [1], [0, 0, 1, 1], [], []>} : vector<8x16xbf16>, vector<16x8xbf16>, vector<8x8xf32> -> vector<8x8xf32>
    %c0_63 = arith.constant 0 : index
    %c16 = arith.constant 16 : index
    %142 = vector.load %arg18[%c0_63, %c16] : memref<8x32xf32, #tpu.memory_space<vmem>>, vector<8x8xf32>
    tpu.vector_store %arg18[%c0_63, %c16], %141 {strides = array<i32>} : memref<8x32xf32, #tpu.memory_space<vmem>>, vector<8x8xf32>,
    %143 = vector.extract_strided_slice %54 {offsets = [0, 24], sizes = [8, 8], strides = [1, 1]} : vector<8x32xf32> to vector<8x8xf32>
    %144 = arith.truncf %143 : vector<8x8xf32> to vector<8x8xbf16>
    %145 = vector.extract_strided_slice %59 {offsets = [0, 24], sizes = [16, 8], strides = [1, 1]} : vector<16x32xf32> to vector<16x8xf32>
    %146 = arith.truncf %145 : vector<16x8xf32> to vector<16x8xbf16>
    %147 = vector.extract_strided_slice %64 {offsets = [0, 24], sizes = [16, 8], strides = [1, 1]} : vector<16x32xf32> to vector<16x8xf32>
    %148 = arith.truncf %147 : vector<16x8xf32> to vector<16x8xbf16>
    %cst_64 = arith.constant dense<0.000000e+00> : vector<8x16xf32>
    %149 = tpu.matmul %144, %146, %cst_64 {dimension_numbers = #tpu.dot_dimension_numbers<[1], [1], [0], [0], [0, 0, 1, 0], [], []>} : vector<8x8xbf16>, vector<16x8xbf16>, vector<8x16xf32> -> vector<8x16xf32>
    %cst_65 = arith.constant 0.353553385 : f32
    %150 = vector.broadcast %cst_65 : f32 to vector<8x16xf32>
    %151 = arith.mulf %149, %150 : vector<8x16xf32>
    %152 = arith.addf %151, %73 : vector<8x16xf32>
    %cst_66 = arith.constant dense<0xFF800000> : vector<8xf32>
    %153 = vector.multi_reduction <maximumf>, %152, %cst_66 [1] : vector<8x16xf32> to vector<8xf32>
    %154 = vector.shape_cast %153 : vector<8xf32> to vector<8x1xf32>
    %155 = vector.broadcast %154 : vector<8x1xf32> to vector<8x16xf32>
    %156 = arith.subf %152, %155 : vector<8x16xf32>
    %157 = math.exp %156 : vector<8x16xf32>
    %cst_67 = arith.constant dense<0.000000e+00> : vector<8xf32>
    %158 = vector.multi_reduction <add>, %157, %cst_67 [1] : vector<8x16xf32> to vector<8xf32>
    %159 = vector.shape_cast %158 : vector<8xf32> to vector<8x1xf32>
    %160 = tpu.reciprocal %159 {approx = true} : vector<8x1xf32> -> vector<8x1xf32>
    %161 = vector.broadcast %160 : vector<8x1xf32> to vector<8x16xf32>
    %162 = arith.mulf %157, %161 : vector<8x16xf32>
    %163 = arith.truncf %162 : vector<8x16xf32> to vector<8x16xbf16>
    %cst_68 = arith.constant dense<0.000000e+00> : vector<8x8xf32>
    %164 = tpu.matmul %163, %148, %cst_68 {dimension_numbers = #tpu.dot_dimension_numbers<[1], [0], [0], [1], [0, 0, 1, 1], [], []>} : vector<8x16xbf16>, vector<16x8xbf16>, vector<8x8xf32> -> vector<8x8xf32>
    %c0_69 = arith.constant 0 : index
    %c24 = arith.constant 24 : index
    %165 = vector.load %arg18[%c0_69, %c24] : memref<8x32xf32, #tpu.memory_space<vmem>>, vector<8x8xf32>
    tpu.vector_store %arg18[%c0_69, %c24], %164 {strides = array<i32>} : memref<8x32xf32, #tpu.memory_space<vmem>>, vector<8x8xf32>,
    %c0_70 = arith.constant 0 : index
    %c0_71 = arith.constant 0 : index
    %166 = vector.load %arg18[%c0_70, %c0_71] : memref<8x32xf32, #tpu.memory_space<vmem>>, vector<8x32xf32>
    %167 = arith.truncf %166 : vector<8x32xf32> to vector<8x32xbf16>
    %c0_72 = arith.constant 0 : index
    %c0_73 = arith.constant 0 : index
    %168 = vector.load %arg15[%c0_72, %c0_73] : memref<32x32xbf16, #tpu.memory_space<vmem>>, vector<32x32xbf16>
    %cst_74 = arith.constant dense<0.000000e+00> : vector<8x32xf32>
    %169 = tpu.matmul %167, %168, %cst_74 {dimension_numbers = #tpu.dot_dimension_numbers<[1], [0], [0], [1], [0, 0, 1, 1], [], []>} : vector<8x32xbf16>, vector<32x32xbf16>, vector<8x32xf32> -> vector<8x32xf32>
    %c0_75 = arith.constant 0 : index
    %c0_76 = arith.constant 0 : index
    %170 = vector.load %arg16[%c0_75, %c0_76] : memref<1x32xf32, #tpu.memory_space<vmem>>, vector<1x32xf32>
    %171 = vector.broadcast %170 : vector<1x32xf32> to vector<8x32xf32>
    %172 = arith.addf %169, %171 : vector<8x32xf32>
    %173 = arith.addf %1, %172 : vector<8x32xf32>
    %c0_77 = arith.constant 0 : index
    %c0_78 = arith.constant 0 : index
    %c0_79 = arith.constant 0 : index
    %174 = vector.load %arg17[%c0_77, %c0_78, %c0_79] : memref<1x8x32xf32, #tpu.memory_space<vmem>>, vector<1x8x32xf32>
    %175 = vector.shape_cast %174 : vector<1x8x32xf32> to vector<8x32xf32>
    %176 = vector.shape_cast %173 : vector<8x32xf32> to vector<1x8x32xf32>
    tpu.vector_store %arg17[%c0_77, %c0_78, %c0_79], %176 {strides = array<i32>} : memref<1x8x32xf32, #tpu.memory_space<vmem>>, vector<1x8x32xf32>,
    return
  }
  func.func @transform_0(%arg0: i32, %arg1: i32) -> (i32, i32, i32) {
    %c0_i32 = arith.constant 0 : i32
    %c0_i32_0 = arith.constant 0 : i32
    return %arg0, %arg1, %c0_i32 : i32, i32, i32
  }
  func.func @transform_1(%arg0: i32, %arg1: i32) -> (i32, i32, i32) {
    %c0_i32 = arith.constant 0 : i32
    %c0_i32_0 = arith.constant 0 : i32
    %c0_i32_1 = arith.constant 0 : i32
    return %arg0, %c0_i32, %c0_i32_0 : i32, i32, i32
  }
  func.func @transform_2(%arg0: i32, %arg1: i32) -> (i32, i32) {
    %c0_i32 = arith.constant 0 : i32
    %c0_i32_0 = arith.constant 0 : i32
    return %arg1, %c0_i32 : i32, i32
  }
  func.func @transform_3(%arg0: i32, %arg1: i32) -> (i32, i32, i32) {
    %c0_i32 = arith.constant 0 : i32
    %c0_i32_0 = arith.constant 0 : i32
    return %arg0, %arg1, %c0_i32 : i32, i32, i32
  }
  func.func @transform_4(%arg0: i32, %arg1: i32) -> (i32, i32, i32) {
    %c0_i32 = arith.constant 0 : i32
    %c0_i32_0 = arith.constant 0 : i32
    %c0_i32_1 = arith.constant 0 : i32
    return %arg0, %c0_i32, %c0_i32_0 : i32, i32, i32
  }
  func.func @transform_5(%arg0: i32, %arg1: i32) -> (i32, i32) {
    %c0_i32 = arith.constant 0 : i32
    %c0_i32_0 = arith.constant 0 : i32
    %c0_i32_1 = arith.constant 0 : i32
    return %c0_i32, %c0_i32_0 : i32, i32
  }
  func.func @transform_6(%arg0: i32, %arg1: i32) -> (i32, i32) {
    %c0_i32 = arith.constant 0 : i32
    %c0_i32_0 = arith.constant 0 : i32
    %c0_i32_1 = arith.constant 0 : i32
    return %c0_i32, %c0_i32_0 : i32, i32
  }
  func.func @transform_7(%arg0: i32, %arg1: i32) -> (i32, i32) {
    %c0_i32 = arith.constant 0 : i32
    %c0_i32_0 = arith.constant 0 : i32
    %c0_i32_1 = arith.constant 0 : i32
    return %c0_i32, %c0_i32_0 : i32, i32
  }
  func.func @transform_8(%arg0: i32, %arg1: i32) -> (i32, i32) {
    %c0_i32 = arith.constant 0 : i32
    %c0_i32_0 = arith.constant 0 : i32
    %c0_i32_1 = arith.constant 0 : i32
    return %c0_i32, %c0_i32_0 : i32, i32
  }
  func.func @transform_9(%arg0: i32, %arg1: i32) -> (i32, i32) {
    %c0_i32 = arith.constant 0 : i32
    %c0_i32_0 = arith.constant 0 : i32
    %c0_i32_1 = arith.constant 0 : i32
    return %c0_i32, %c0_i32_0 : i32, i32
  }
  func.func @transform_10(%arg0: i32, %arg1: i32) -> (i32, i32) {
    %c0_i32 = arith.constant 0 : i32
    %c0_i32_0 = arith.constant 0 : i32
    %c0_i32_1 = arith.constant 0 : i32
    return %c0_i32, %c0_i32_0 : i32, i32
  }
  func.func @transform_11(%arg0: i32, %arg1: i32) -> (i32, i32) {
    %c0_i32 = arith.constant 0 : i32
    %c0_i32_0 = arith.constant 0 : i32
    %c0_i32_1 = arith.constant 0 : i32
    return %c0_i32, %c0_i32_0 : i32, i32
  }
  func.func @transform_12(%arg0: i32, %arg1: i32) -> (i32, i32) {
    %c0_i32 = arith.constant 0 : i32
    %c0_i32_0 = arith.constant 0 : i32
    %c0_i32_1 = arith.constant 0 : i32
    return %c0_i32, %c0_i32_0 : i32, i32
  }
  func.func @transform_13(%arg0: i32, %arg1: i32) -> (i32, i32) {
    %c0_i32 = arith.constant 0 : i32
    %c0_i32_0 = arith.constant 0 : i32
    %c0_i32_1 = arith.constant 0 : i32
    return %c0_i32, %c0_i32_0 : i32, i32
  }
  func.func @transform_14(%arg0: i32, %arg1: i32) -> (i32, i32) {
    %c0_i32 = arith.constant 0 : i32
    %c0_i32_0 = arith.constant 0 : i32
    %c0_i32_1 = arith.constant 0 : i32
    return %c0_i32, %c0_i32_0 : i32, i32
  }
  func.func @transform_15(%arg0: i32, %arg1: i32) -> (i32, i32, i32) {
    %c0_i32 = arith.constant 0 : i32
    %c0_i32_0 = arith.constant 0 : i32
    return %arg0, %arg1, %c0_i32 : i32, i32, i32
  }
}

module attributes {stable_mosaic.version = 11 : i64} {
  func.func @_ff_block_kernel(%arg0: i32, %arg1: memref<32x32xf32, #tpu.memory_space<vmem>>, %arg2: memref<1x32xf32, #tpu.memory_space<vmem>>, %arg3: memref<1x32xf32, #tpu.memory_space<vmem>>, %arg4: memref<32x64xbf16, #tpu.memory_space<vmem>>, %arg5: memref<1x64xf32, #tpu.memory_space<vmem>>, %arg6: memref<64x32xbf16, #tpu.memory_space<vmem>>, %arg7: memref<1x32xf32, #tpu.memory_space<vmem>>, %arg8: memref<32x32xf32, #tpu.memory_space<vmem>>) attributes {dimension_semantics = [#tpu.dimension_semantics<parallel>], iteration_bounds = array<i64: 1>, scalar_prefetch = 0 : i64, scratch_operands = 0 : i64, tpu.core_type = #tpu.core_type<tc>, window_params = [{transform_indices = @transform_0, window_bounds = array<i64: 32, 32>}, {pipeline_mode = #tpu.pipeline_mode<synchronous>, transform_indices = @transform_1, window_bounds = array<i64: 1, 32>}, {pipeline_mode = #tpu.pipeline_mode<synchronous>, transform_indices = @transform_2, window_bounds = array<i64: 1, 32>}, {pipeline_mode = #tpu.pipeline_mode<synchronous>, transform_indices = @transform_3, window_bounds = array<i64: 32, 64>}, {pipeline_mode = #tpu.pipeline_mode<synchronous>, transform_indices = @transform_4, window_bounds = array<i64: 1, 64>}, {pipeline_mode = #tpu.pipeline_mode<synchronous>, transform_indices = @transform_5, window_bounds = array<i64: 64, 32>}, {pipeline_mode = #tpu.pipeline_mode<synchronous>, transform_indices = @transform_6, window_bounds = array<i64: 1, 32>}, {transform_indices = @transform_7, window_bounds = array<i64: 32, 32>}]} {
    %c0 = arith.constant 0 : index
    %c0_0 = arith.constant 0 : index
    %0 = vector.load %arg1[%c0, %c0_0] : memref<32x32xf32, #tpu.memory_space<vmem>>, vector<32x32xf32>
    %c0_1 = arith.constant 0 : index
    %c0_2 = arith.constant 0 : index
    %1 = vector.load %arg2[%c0_1, %c0_2] : memref<1x32xf32, #tpu.memory_space<vmem>>, vector<1x32xf32>
    %c0_3 = arith.constant 0 : index
    %c0_4 = arith.constant 0 : index
    %2 = vector.load %arg3[%c0_3, %c0_4] : memref<1x32xf32, #tpu.memory_space<vmem>>, vector<1x32xf32>
    %cst = arith.constant dense<0.000000e+00> : vector<32xf32>
    %3 = vector.multi_reduction <add>, %0, %cst [1] : vector<32x32xf32> to vector<32xf32>
    %4 = vector.shape_cast %3 : vector<32xf32> to vector<32x1xf32>
    %cst_5 = arith.constant 3.200000e+01 : f32
    %5 = vector.broadcast %cst_5 : f32 to vector<32x1xf32>
    %6 = arith.divf %4, %5 : vector<32x1xf32>
    %7 = vector.broadcast %6 : vector<32x1xf32> to vector<32x32xf32>
    %8 = arith.subf %0, %7 : vector<32x32xf32>
    %9 = arith.mulf %8, %8 : vector<32x32xf32>
    %cst_6 = arith.constant dense<0.000000e+00> : vector<32xf32>
    %10 = vector.multi_reduction <add>, %9, %cst_6 [1] : vector<32x32xf32> to vector<32xf32>
    %11 = vector.shape_cast %10 : vector<32xf32> to vector<32x1xf32>
    %cst_7 = arith.constant 3.200000e+01 : f32
    %12 = vector.broadcast %cst_7 : f32 to vector<32x1xf32>
    %13 = arith.divf %11, %12 : vector<32x1xf32>
    %cst_8 = arith.constant 9.99999974E-6 : f32
    %14 = vector.broadcast %cst_8 : f32 to vector<32x1xf32>
    %15 = arith.addf %13, %14 : vector<32x1xf32>
    %16 = math.rsqrt %15 : vector<32x1xf32>
    %17 = vector.broadcast %16 : vector<32x1xf32> to vector<32x32xf32>
    %18 = arith.mulf %8, %17 : vector<32x32xf32>
    %19 = vector.broadcast %1 : vector<1x32xf32> to vector<32x32xf32>
    %20 = arith.mulf %18, %19 : vector<32x32xf32>
    %21 = vector.broadcast %2 : vector<1x32xf32> to vector<32x32xf32>
    %22 = arith.addf %20, %21 : vector<32x32xf32>
    %23 = arith.truncf %22 : vector<32x32xf32> to vector<32x32xbf16>
    %c0_9 = arith.constant 0 : index
    %c0_10 = arith.constant 0 : index
    %24 = vector.load %arg4[%c0_9, %c0_10] : memref<32x64xbf16, #tpu.memory_space<vmem>>, vector<32x64xbf16>
    %cst_11 = arith.constant dense<0.000000e+00> : vector<32x64xf32>
    %25 = tpu.matmul %23, %24, %cst_11 {dimension_numbers = #tpu.dot_dimension_numbers<[1], [0], [0], [1], [0, 0, 1, 1], [], []>} : vector<32x32xbf16>, vector<32x64xbf16>, vector<32x64xf32> -> vector<32x64xf32>
    %c0_12 = arith.constant 0 : index
    %c0_13 = arith.constant 0 : index
    %26 = vector.load %arg5[%c0_12, %c0_13] : memref<1x64xf32, #tpu.memory_space<vmem>>, vector<1x64xf32>
    %27 = vector.broadcast %26 : vector<1x64xf32> to vector<32x64xf32>
    %28 = arith.addf %25, %27 : vector<32x64xf32>
    %cst_14 = arith.constant 5.000000e-01 : f32
    %29 = vector.broadcast %cst_14 : f32 to vector<32x64xf32>
    %30 = arith.mulf %29, %28 : vector<32x64xf32>
    %cst_15 = arith.constant 0.707106769 : f32
    %31 = vector.broadcast %cst_15 : f32 to vector<32x64xf32>
    %32 = arith.mulf %28, %31 : vector<32x64xf32>
    %33 = math.erf %32 : vector<32x64xf32>
    %cst_16 = arith.constant 1.000000e+00 : f32
    %34 = vector.broadcast %cst_16 : f32 to vector<32x64xf32>
    %35 = arith.addf %34, %33 : vector<32x64xf32>
    %36 = arith.mulf %30, %35 : vector<32x64xf32>
    %37 = arith.truncf %36 : vector<32x64xf32> to vector<32x64xbf16>
    %c0_17 = arith.constant 0 : index
    %c0_18 = arith.constant 0 : index
    %38 = vector.load %arg6[%c0_17, %c0_18] : memref<64x32xbf16, #tpu.memory_space<vmem>>, vector<64x32xbf16>
    %cst_19 = arith.constant dense<0.000000e+00> : vector<32x32xf32>
    %39 = tpu.matmul %37, %38, %cst_19 {dimension_numbers = #tpu.dot_dimension_numbers<[1], [0], [0], [1], [0, 0, 1, 1], [], []>} : vector<32x64xbf16>, vector<64x32xbf16>, vector<32x32xf32> -> vector<32x32xf32>
    %c0_20 = arith.constant 0 : index
    %c0_21 = arith.constant 0 : index
    %40 = vector.load %arg7[%c0_20, %c0_21] : memref<1x32xf32, #tpu.memory_space<vmem>>, vector<1x32xf32>
    %41 = vector.broadcast %40 : vector<1x32xf32> to vector<32x32xf32>
    %42 = arith.addf %39, %41 : vector<32x32xf32>
    %43 = arith.addf %0, %42 : vector<32x32xf32>
    %c0_22 = arith.constant 0 : index
    %c0_23 = arith.constant 0 : index
    %44 = vector.load %arg8[%c0_22, %c0_23] : memref<32x32xf32, #tpu.memory_space<vmem>>, vector<32x32xf32>
    tpu.vector_store %arg8[%c0_22, %c0_23], %43 {strides = array<i32>} : memref<32x32xf32, #tpu.memory_space<vmem>>, vector<32x32xf32>,
    return
  }
  func.func @transform_0(%arg0: i32) -> (i32, i32) {
    %c0_i32 = arith.constant 0 : i32
    %c0_i32_0 = arith.constant 0 : i32
    return %arg0, %c0_i32 : i32, i32
  }
  func.func @transform_1(%arg0: i32) -> (i32, i32) {
    %c0_i32 = arith.constant 0 : i32
    %c0_i32_0 = arith.constant 0 : i32
    %c0_i32_1 = arith.constant 0 : i32
    return %c0_i32, %c0_i32_0 : i32, i32
  }
  func.func @transform_2(%arg0: i32) -> (i32, i32) {
    %c0_i32 = arith.constant 0 : i32
    %c0_i32_0 = arith.constant 0 : i32
    %c0_i32_1 = arith.constant 0 : i32
    return %c0_i32, %c0_i32_0 : i32, i32
  }
  func.func @transform_3(%arg0: i32) -> (i32, i32) {
    %c0_i32 = arith.constant 0 : i32
    %c0_i32_0 = arith.constant 0 : i32
    %c0_i32_1 = arith.constant 0 : i32
    return %c0_i32, %c0_i32_0 : i32, i32
  }
  func.func @transform_4(%arg0: i32) -> (i32, i32) {
    %c0_i32 = arith.constant 0 : i32
    %c0_i32_0 = arith.constant 0 : i32
    %c0_i32_1 = arith.constant 0 : i32
    return %c0_i32, %c0_i32_0 : i32, i32
  }
  func.func @transform_5(%arg0: i32) -> (i32, i32) {
    %c0_i32 = arith.constant 0 : i32
    %c0_i32_0 = arith.constant 0 : i32
    %c0_i32_1 = arith.constant 0 : i32
    return %c0_i32, %c0_i32_0 : i32, i32
  }
  func.func @transform_6(%arg0: i32) -> (i32, i32) {
    %c0_i32 = arith.constant 0 : i32
    %c0_i32_0 = arith.constant 0 : i32
    %c0_i32_1 = arith.constant 0 : i32
    return %c0_i32, %c0_i32_0 : i32, i32
  }
  func.func @transform_7(%arg0: i32) -> (i32, i32) {
    %c0_i32 = arith.constant 0 : i32
    %c0_i32_0 = arith.constant 0 : i32
    return %arg0, %c0_i32 : i32, i32
  }
}

</mosaic_0001>

<bundles_post_ra>
// kernel: forward.6
= control target key start
LH: loop header
LB: loop body
LE: loop exit
PB: predicated region body
PF: predicated region fallthrough
CT: control target
= control target key end

     0   :  { %s552_s15 = smov 0   ;;  %s554_s16 = smov 0   ;;  %s612_s0 = inlined_call_operand.vmem [shape: f32[2,15,74], index: 0, kind: input, shape index: {}]   ;;  %s613_s1 = inlined_call_operand.vmem [shape: bf16[74,32], index: 1, kind: input, shape index: {}]   ;;  %s614_s2 = inlined_call_operand.vmem [shape: f32[1,32], index: 2, kind: input, shape index: {}]   ;;  %s615_s3 = inlined_call_operand.vmem [shape: f32[15,32], index: 3, kind: input, shape index: {}]   ;;  %s616_s4 = inlined_call_operand.vmem [shape: f32[2,15,32], index: 4, kind: output, shape index: {}]  }
   0x1   :  { %s556_s17 = smov 0  }
   0x2 LB: > { %s26_s18 = sadd.s32 1, %s521_s16  ;;  %p443_p0 = scmp.ge.s32.totalorder %s525_s17, 1  ;;  %s525_s17 = sphi %s556_s17, %s14_s17   ;;  %s521_s16 = sphi %s554_s16, %s618_s16   ;;  %s517_s15 = sphi %s552_s15, %s617_s15  }
   0x3   : > { %p28_p1 = scmp.ge.s32.totalorder %s26_s18, 2  ;;  %p194_p2 = scmp.lt.s32.totalorder %s525_s17, 3 }
   0x5   : > { %s620_s18 = smov (%p28_p1, %s26_s18), 0  ;;  %p195_p3 = pnand %p443_p0, %p194_p2 }
   0x6   : > { %p234_p4 = scmp.lt.s32.totalorder (!%p195_p3), %s517_s15, 1 }
   0x7   : > { %198 = sbr.rel (%p195_p3) target bundleno = 174 (0xae), region = 36 }
   0xc   : > { %v466_v0 = vld [vmem:[%s613_s1 + $0x20] sm:$0xf]  ;;  %v477_v1 = vld [vmem:[%s613_s1 + $0x20] sm:$0x10]  ;;  %vm310_vm0 = vcmask 1044480   ;;  %v476_v4 = vld [vmem:[%s613_s1 + $0x18] sm:$0xff] }
   0xd   : > { %v467_v2 = vor.u32 %v477_v1, %v466_v0  ;;  %s622_s15 = smov (!%p234_p4, %s517_s15), 1  ;;  %v475_v5 = vld [vmem:[%s613_s1 + $0x10] sm:$0xff]  ;;  %v474_v6 = vld [vmem:[%s613_s1 + $0x8] sm:$0xff]  ;;  %v473_v7 = vld [vmem:[%s613_s1] sm:$0xff]  ;;  %vm306_vm1 = vcmask 605184   ;;  %vm332_vm2 = vcmask 261120  }
   0xe   : > { %s471_s27 = sshll.u32 %s622_s15, 4  ;;  %v502_v11 = vld [vmem:[%s614_s2] ss:$0 sm:$0xff]  ;;  %v329_v17 = vld [vmem:[%s615_s3 + $0x8] sm:$0x7f]  ;;  %vm334_vm3 = vcmask 260096  }
   0xf   : > { %v312_v3 = vsel %vm310_vm0, %v467_v2, 0  ;;  %s241_s6 = scalar_lea.vmem %s612_s0, %s471_s27  ;;  %v328_v13 = vld [vmem:[%s615_s3] sm:$0xff]  ;;  %s257_s15 = scalar_lea.vmem %s616_s4, %s471_s27 }
  0x10   : > { %317 = vmatpush.bf16.msra.mxu0 %v312_v3  ;;  %v260_v8 = vld [vmem:[%s241_s6] sm:$0xff]  ;;  %v261_v9 = vld [vmem:[%s241_s6 + $0x8] sm:$0x7f] }
  0x11   : > { %v262_v10 = vpack.c.bf16 %v261_v9, %v260_v8 }
  0x14   : > { %318 = vmatpush.bf16.msra.mxu0 %v476_v4 }
  0x18   : > { %319 = vmatpush.bf16.msra.mxu0 %v475_v5 }
  0x1c   : > { %320 = vmatpush.bf16.msra.mxu0 %v474_v6 }
  0x20   : > { %321 = vmatpush.bf16.msra.mxu0 %v473_v7 }
  0x23   : > { %468 = vmatmul.msk.bf16.vlgmr.msra.gmra.mxu0 %vm306_vm1, %v262_v10 }
  0xa0   : > { %v323_v12 = vpop.f32.mrf.mxu0 }
  0xa1   : > { %v324_v14 = vadd.f32 %v502_v11, %v323_v12 }
  0xa3   : > { %v330_v15 = vadd.f32 %v328_v13, %v324_v14 }
  0xa5   : > { %333 = vst.msk [vmem:[%s257_s15] sm:$0xff] %vm332_vm2, %v330_v15 }
  0xa8   : > { %v325_v16 = vpop.f32.mrf.mxu0 }
  0xa9   : > { %v326_v18 = vadd.f32 %v502_v11, %v325_v16 }
  0xab   : > { %v331_v19 = vadd.f32 %v329_v17, %v326_v18 }
  0xad   : > { %335 = vst.msk [vmem:[%s257_s15 + $0x8] sm:$0x7f] %vm334_vm3, %v331_v19 }
  0xae PF: > { %s14_s17 = sadd.s32 1, %s525_s17   ;;  %s617_s15 = smov %s521_s16 }
  0xaf   : > { %p11_p5 = scmp.ge.s32.totalorder %s14_s17, 4   ;;  %s618_s16 = smov %s620_s18 }
  0xb1   :  { %13 = sbr.rel (!%p11_p5) target bundleno = 2 (0x2), region = 69 }

// kernel: forward.7
= control target key start
LH: loop header
LB: loop body
LE: loop exit
PB: predicated region body
PF: predicated region fallthrough
CT: control target
= control target key end

     0   :  { %11 = vsyncpa [#allocation3], 0  ;;  %s818_s21 = smov 0   ;;  %s820_s22 = smov 0   ;;  %s871_s0 = inlined_call_operand.vmem [shape: f32[6], index: 0, kind: input, shape index: {}]   ;;  %s872_s1 = inlined_call_operand.vmem [shape: f32[2,15,15], index: 1, kind: input, shape index: {}]   ;;  %s873_s2 = inlined_call_operand.vmem [shape: f32[2,15,15], index: 2, kind: input, shape index: {}]   ;;  %s874_s3 = inlined_call_operand.vmem [shape: f32[2,15,15], index: 3, kind: input, shape index: {}]   ;;  %s875_s4 = inlined_call_operand.vmem [shape: f32[2,15,15], index: 4, kind: input, shape index: {}]   ;;  %s876_s5 = inlined_call_operand.vmem [shape: f32[2,15,15], index: 5, kind: input, shape index: {}]   ;;  %s877_s6 = inlined_call_operand.vmem [shape: bf16[2,15,15], index: 6, kind: output, shape index: {}]  }
   0x1   :  { %s822_s23 = smov 0  }
   0x2 LB: > { %s672_s24 = sadd.s32 4294967295, %s780_s23   ;;  %s29_s25 = sadd.s32 1, %s776_s22  ;;  %s780_s23 = sphi %s822_s23, %s17_s23   ;;  %s776_s22 = sphi %s820_s22, %s879_s22   ;;  %s772_s21 = sphi %s818_s21, %s878_s21  }
   0x3   : > { %p31_p0 = scmp.ge.s32.totalorder %s29_s25, 2  ;;  %p674_p1 = scmp.ge.s32.totalorder %s780_s23, 1 }
   0x4   : > { %p223_p2 = scmp.lt.s32.totalorder %s780_s23, 3  ;;  %p712_p4 = scmp.eq.s32.totalorder %s672_s24, 0 }
   0x5   : > { %s881_s25 = smov (%p31_p0, %s29_s25), 0  ;;  %s235_s28 = sshll.u32 %s871_s0, 4  ;;  %s236_s28 = int_to_ptr.vmem [resolvable:$true] %s235_s28 }
   0x6   : > { %p224_p3 = pnand %p674_p1, %p223_p2  ;;  %s782_s29 = smov [#allocation2]  }
   0x8   : > { %p708_p5 = pneg %p224_p3  ;;  %313 = sbr.rel (%p224_p3) target bundleno = 40 (0x28), region = 44 }
   0xa   : > { %p709_p6 = pnand %p712_p4, %p708_p5 }
   0xc   : > { %711 = dma.vmem_to_smem (!%p709_p6), %s236_s28, 16, %s782_s29, [#allocation3]  }
   0xd   : > { %767 = dma.done.wait (%p712_p4), [#allocation3], 16  }
   0xe   : > { %769 = vsyncadd (%p712_p4), [#allocation3], 4294967280 }
   0xf   : > { %320 = sfence }
  0x10   : > { %p390_p7 = scmp.lt.s32.totalorder %s772_s21, 1  ;;  %s451_s30 = sld [smem:[#allocation2]]  ;;  %vm493_vm0 = vcmask 117760   ;;  %vm496_vm1 = vsmask.f32 3328 }
  0x11   : > { %s691_s7 = sld [smem:[#allocation2 + $0x1]]  ;;  %vm497_vm2 = vmand %vm493_vm0, %vm496_vm1 }
  0x12   : > { %s883_s21 = smov (!%p390_p7, %s772_s21), 1  ;;  %s692_s8 = sld [smem:[#allocation2 + $0x2]] }
  0x13   : > { %s698_s9 = sshll.u32 %s883_s21, 4  ;;  %s693_s19 = sld [smem:[#allocation2 + $0x3]] }
  0x14   : > { %s397_s12 = scalar_lea.vmem %s872_s1, %s698_s9  ;;  %s407_s15 = scalar_lea.vmem %s873_s2, %s698_s9 }
  0x15   : > { %s417_s18 = scalar_lea.vmem %s874_s3, %s698_s9  ;;  %v449_v0 = vld [vmem:[%s397_s12] sm:$0xff]  ;;  %v450_v1 = vld [vmem:[%s397_s12 + $0x8] sm:$0x7f]  ;;  %s427_s26 = scalar_lea.vmem %s875_s4, %s698_s9 }
  0x16   : > { %v452_v2 = vstv %s451_s30  ;;  %v455_v3 = vld [vmem:[%s407_s15] sm:$0xff]  ;;  %v456_v6 = vld [vmem:[%s407_s15 + $0x8] sm:$0x7f]  ;;  %s694_s27 = sld [smem:[#allocation2 + $0x4]]  ;;  %s437_s30 = scalar_lea.vmem %s876_s5, %s698_s9 }
  0x17   : > { %v453_v4 = vmul.f32 %v452_v2, %v449_v0  ;;  %v454_v5 = vmul.f32 %v452_v2, %v450_v1  ;;  %v458_v7 = vstv %s691_s7  ;;  %v463_v8 = vld [vmem:[%s417_s18] sm:$0xff]  ;;  %v464_v9 = vld [vmem:[%s417_s18 + $0x8] sm:$0x7f]  ;;  %s695_s7 = sld [smem:[#allocation2 + $0x5]] }
  0x18   : > { %v459_v10 = vmul.f32 %v458_v7, %v455_v3  ;;  %v460_v11 = vmul.f32 %v458_v7, %v456_v6  ;;  %v466_v12 = vstv %s692_s8  ;;  %v471_v17 = vld [vmem:[%s427_s26] sm:$0xff]  ;;  %v472_v18 = vld [vmem:[%s427_s26 + $0x8] sm:$0x7f]  ;;  %s703_s8 = sshll.u32 %s883_s21, 3 }
  0x19   : > { %v467_v15 = vmul.f32 %v466_v12, %v463_v8  ;;  %v468_v16 = vmul.f32 %v466_v12, %v464_v9  ;;  %v479_v21 = vld [vmem:[%s437_s30] sm:$0xff]  ;;  %v480_v22 = vld [vmem:[%s437_s30 + $0x8] sm:$0x7f]  ;;  %v474_v23 = vstv %s693_s19  ;;  %s447_s11 = scalar_lea.vmem %s877_s6, %s703_s8 }
  0x1a   : > { %v461_v13 = vadd.f32 %v459_v10, %v453_v4  ;;  %v462_v14 = vadd.f32 %v460_v11, %v454_v5  ;;  %v475_v24 = vmul.f32 %v474_v23, %v471_v17  ;;  %v476_v25 = vmul.f32 %v474_v23, %v472_v18  ;;  %v498_v36 = vld [vmem:[%s447_s11 + $0x4] sm:$0xf] }
  0x1c   : > { %v469_v19 = vadd.f32 %v467_v15, %v461_v13  ;;  %v470_v20 = vadd.f32 %v468_v16, %v462_v14  ;;  %v482_v26 = vstv %s694_s27 }
  0x1d   : > { %v483_v27 = vmul.f32 %v482_v26, %v479_v21  ;;  %v484_v28 = vmul.f32 %v482_v26, %v480_v22  ;;  %v488_v31 = vstv %s695_s7 }
  0x1e   : > { %v477_v29 = vadd.f32 %v475_v24, %v469_v19  ;;  %v478_v30 = vadd.f32 %v476_v25, %v470_v20 }
  0x20   : > { %v485_v32 = vadd.f32 %v483_v27, %v477_v29  ;;  %v486_v33 = vadd.f32 %v484_v28, %v478_v30 }
  0x22   : > { %v489_v34 = vadd.f32 %v488_v31, %v485_v32  ;;  %v490_v35 = vadd.f32 %v488_v31, %v486_v33 }
  0x24   : > { %v491_v37 = vpack.c.bf16 %v489_v34, %v489_v34  ;;  %v492_v38 = vpack.c.bf16 %v490_v35, %v490_v35 }
  0x26   : > { %494 = vst.msk [vmem:[%s447_s11] sm:$0xf] %vm493_vm0, %v491_v37  ;;  %v499_v39 = vsel %vm497_vm2, %v492_v38, %v498_v36 }
  0x27   : > { %500 = vst [vmem:[%s447_s11 + $0x4] sm:$0xf] %v499_v39 }
  0x28 PF: > { %s17_s23 = sadd.s32 1, %s780_s23   ;;  %s878_s21 = smov %s776_s22 }
  0x29   : > { %p14_p8 = scmp.ge.s32.totalorder %s17_s23, 4   ;;  %s879_s22 = smov %s881_s25 }
  0x2b   :  { %16 = sbr.rel (!%p14_p8) target bundleno = 2 (0x2), region = 91 }
  0x30   :  { %531 = vsyncpa [#allocation3], 1 }
  0x31   :  { %533 = vsyncpa [#allocation3 + $0x1], 1 }

// kernel: forward.8
= control target key start
LH: loop header
LB: loop body
LE: loop exit
PB: predicated region body
PF: predicated region fallthrough
CT: control target
= control target key end

     0   :  { %s1513_s18 = smov 0   ;;  %s1515_s19 = smov 0   ;;  %s1689_s0 = inlined_call_operand.vmem [shape: f32[2,16,32], index: 0, kind: input, shape index: {}, may-alias: {0,1}]   ;;  %s1690_s1 = inlined_call_operand.vmem [shape: f32[2,16,32], index: 1, kind: input, shape index: {}, may-alias: {0,1}]   ;;  %s1691_s2 = inlined_call_operand.vmem [shape: f32[16,16], index: 2, kind: input, shape index: {}]   ;;  %s1692_s3 = inlined_call_operand.vmem [shape: bf16[2,16,16], index: 3, kind: input, shape index: {}]   ;;  %s1693_s4 = inlined_call_operand.vmem [shape: f32[2,1,16], index: 4, kind: input, shape index: {}]   ;;  %s1694_s5 = inlined_call_operand.vmem [shape: f32[1,32], index: 5, kind: input, shape index: {}]   ;;  %s1695_s6 = inlined_call_operand.vmem [shape: f32[1,32], index: 6, kind: input, shape index: {}]   ;;  %s1696_s7 = inlined_call_operand.vmem [shape: bf16[32,32], index: 7, kind: input, shape index: {}]   ;;  %s1697_s8 = inlined_call_operand.vmem [shape: bf16[32,32], index: 8, kind: input, shape index: {}]   ;;  %s1698_s9 = inlined_call_operand.vmem [shape: bf16[32,32], index: 9, kind: input, shape index: {}]   ;;  %s1699_s10 = inlined_call_operand.vmem [shape: f32[1,32], index: 10, kind: input, shape index: {}]   ;;  %s1700_s11 = inlined_call_operand.vmem [shape: f32[1,32], index: 11, kind: input, shape index: {}]   ;;  %s1701_s12 = inlined_call_operand.vmem [shape: f32[1,32], index: 12, kind: input, shape index: {}]   ;;  %s1702_s13 = inlined_call_operand.vmem [shape: bf16[32,32], index: 13, kind: input, shape index: {}]   ;;  %s1703_s14 = inlined_call_operand.vmem [shape: f32[1,32], index: 14, kind: input, shape index: {}]   ;;  %s1704_s15 = inlined_call_operand.vmem [shape: f32[2,16,32], index: 15, kind: output, shape index: {}]  }
   0x1   :  { %1708 = sst [smem:[#allocation8_spill]] %s1690_s1  ;;  %s1517_s20 = smov 0  }
   0x2   :  { %s1519_s21 = smov 0   ;;  %s1521_s22 = smov 0  }
   0x3 LB: > { %1709 = sst [smem:[#allocation3_spill]] %s1416_s20  ;;  %s34_s23 = sadd.s32 1, %s1416_s20  ;;  %s1424_s22 = sphi %s1521_s22, %s25_s22   ;;  %s1420_s21 = sphi %s1519_s21, %s1719_s21   ;;  %s1416_s20 = sphi %s1517_s20, %s1718_s20   ;;  %s1412_s19 = sphi %s1515_s19, %s1717_s19   ;;  %s1408_s18 = sphi %s1513_s18, %s1716_s18  }
   0x4   : > { %1710 = sst [smem:[#allocation4_spill]] %s1420_s21  ;;  %s37_s24 = sadd.s32 1, %s1420_s21 }
   0x5   : > { %1711 = sst [smem:[#allocation5_spill]] %s1424_s22  ;;  %p35_p0 = scmp.ge.s32.totalorder %s34_s23, 2 }
   0x6   : > { %p1243_p1 = scmp.ge.s32.totalorder %s1424_s22, 1  ;;  %p498_p2 = scmp.lt.s32.totalorder %s1424_s22, 5 }
   0x7   : > { %s1721_s23 = smov (%p35_p0, %s34_s23), 0  ;;  %s1723_s24 = smov (!%p35_p0, %s37_s24), %s1420_s21 }
   0x8   : > { %1712 = sst [smem:[#allocation6_spill]] %s1721_s23  ;;  %p499_p3 = pnand %p1243_p1, %p498_p2 }
   0x9   : > { %p39_p4 = scmp.ge.s32.totalorder %s1723_s24, 2  ;;  %p572_p5 = scmp.lt.s32.totalorder (!%p499_p3), %s1412_s19, 1 }
   0xa   : > { %502 = sbr.rel (%p499_p3) target bundleno = 1361 (0x551), region = 80  ;;  %p574_p6 = scmp.lt.s32.totalorder (!%p499_p3), %s1408_s18, 1 }
   0xb   : > { %s1725_s24 = smov (%p39_p4, %s1723_s24), 0  ;;  %s1714_s1 = sld [smem:[#allocation8_spill]] (!%p499_p3) }
   0xc   : > { %1713 = sst [smem:[#allocation7_spill]] %s1725_s24  ;;  %s1427_s27 = smov (!%p499_p3), 120  }
   0xd   : > { %s1428_s29 = smov (!%p499_p3), 112   ;;  %s1431_s30 = smov (!%p499_p3), 24  }
   0xf   : > { %s1727_s19 = smov (!%p572_p5, %s1412_s19), 1  ;;  %s1729_s18 = smov (!%p574_p6, %s1408_s18), 1  ;;  %vm614_vm0 = vcmask 261120   ;;  %v1426_v12 = vmov 32.0   ;;  %v1303_v34 = vld [vmem:[%s1697_s8 + $0x8] sm:$0xff]  ;;  %v1302_v38 = vld [vmem:[%s1697_s8] sm:$0xff] }
  0x10   : > { %s1299_s25 = sshll.u32 %s1727_s19, 4  ;;  %s599_s28 = scalar_lea.vmem %s1693_s4, %s1727_s19  ;;  %1362 = vrcp.f32 %v1426_v12  ;;  %v1305_v35 = vld [vmem:[%s1698_s9 + $0x8] sm:$0xff]  ;;  %767 = vmatpush.bf16.msra.mxu1 %v1303_v34  ;;  %v1304_v39 = vld [vmem:[%s1698_s9] sm:$0xff]  ;;  %vm821_vm11 = vcmask 64512   ;;  %vm843_vm12 = vcmask 130048   ;;  %vm936_vm13 = vcmask 130112  }
  0x11   : > { %s584_s16 = scalar_lea.vmem %s1714_s1, %s1299_s25  ;;  %s1244_s17 = sshll.u32 %s1727_s19, 1  ;;  %v1355_v7 = vld [vmem:[%s599_s28] ss:$0 sm:$0xff]  ;;  %801 = vmatpush.bf16.msra.mxu2 %v1305_v35  ;;  %v1301_v41 = vld [vmem:[%s1696_s7 + $0x8] sm:$0xff]  ;;  %vm998_vm14 = vcmask 195712   ;;  %vm1060_vm15 = vcmask 261312  }
  0x12   : > { %v610_v0 = vld [vmem:[%s584_s16] sm:$0xff]  ;;  %s1549_s23 = sadd.s32 %s1244_s17, %s1729_s18  ;;  %s1248_s24 = sshll.u32 %s1729_s18, 3  ;;  %v611_v3 = vld [vmem:[%s584_s16 + $0x8] sm:$0xff]  ;;  %731 = vmatpush.bf16.msra.mxu0 %v1301_v41 }
  0x13   : > { %v653_v1 = vsel %vm614_vm0, %v610_v0, 0.0  ;;  %s1245_s21 = sshll.u32 %s1549_s23, 3  ;;  %s588_s26 = scalar_lea.vmem %s1691_s2, %s1248_s24  ;;  %v656_v9 = vsel %vm614_vm0, %v611_v3, 0.0  ;;  %v1300_v43 = vld [vmem:[%s1696_s7] sm:$0xff] }
  0x14   : > { %654 = vadd.xlane.f32.xlu0 %v653_v1  ;;  %s579_s19 = scalar_lea.vmem %s1689_s0, %s1245_s21  ;;  %s1250_s25 = sshll.u32 %s1549_s23, 2  ;;  %v809_v5 = vld [vmem:[%s588_s26] sm:$0xff]  ;;  %768 = vmatpush.bf16.msra.mxu1 %v1302_v38 }
  0x15   : > { %s596_s1 = scalar_lea.vmem %s1692_s3, %s1250_s25  ;;  %v1565_v2 = vld [vmem:[%s579_s19] sm:$0xff]  ;;  %802 = vmatpush.bf16.msra.mxu2 %v1304_v39  ;;  %s1429_s19 = smov 104  }
  0x16   : > { %v615_v4 = vsel %vm614_vm0, %v1565_v2, 0.0  ;;  %v810_v6 = vld [vmem:[%s596_s1] sm:$0xf]  ;;  %v1363_v13 = vpop.eup %1362  ;;  %732 = vmatpush.bf16.msra.mxu0 %v1300_v43  ;;  %s1430_s25 = smov 8   ;;  %s1432_s17 = smov 16  }
  0x17   : > { %v811_v8 = vunpack.c.l.bf16 %v810_v6  ;;  %616 = vadd.xlane.f32.xlu1 %v615_v4  ;;  %v619_v14 = vmul.f32 32.0, %v1363_v13  ;;  %vm623_vm1 = vweird.f32 %v1363_v13  ;;  %v1356_v63 = vld [vmem:[%s1694_s5] ss:$0 sm:$0xff] }
  0x18   : > { %v1357_v6 = vld [vmem:[%s1695_s6] ss:$0 sm:$0xff] }
  0x19   : > { %v812_v10 = vadd.f32 %v811_v8, %v809_v5  ;;  %v620_v15 = vsub.f32 1.0, %v619_v14 }
  0x1b   : > { %v1570_v11 = vadd.f32 %v1355_v7, %v812_v10  ;;  %v621_v16 = vmul.f32 %v1363_v13, %v620_v15 }
  0x1c   : > { %657 = vadd.xlane.f32.xlu0 %v656_v9 }
  0x1d   : > { %v622_v17 = vadd.f32 %v1363_v13, %v621_v16 }
  0x1f   : > { %v624_v18 = vsel %vm623_vm1, %v1363_v13, %v622_v17 }
  0x87   : > { %v655_v19 = vpop.xlane.xlu0 %654 }
  0x88   : > { %v659_v20 = vmul.f32 %v655_v19, %v624_v18 }
  0x8a   : > { %v661_v21 = vsub.f32 %v610_v0, %v659_v20  ;;  %v617_v23 = vpop.xlane.xlu1 %616 }
  0x8b   : > { %v625_v27 = vmul.f32 %v624_v18, %v617_v23  ;;  %v1360_v23 = vld [vmem:[%s1699_s10] ss:$0 sm:$0xff] }
  0x8c   : > { %v663_v22 = vmul.f32 %v661_v21, %v661_v21 }
  0x8d   : > { %v1574_v30 = vsub.f32 %v1565_v2, %v625_v27 }
  0x8e   : > { %v665_v24 = vsel %vm614_vm0, %v663_v22, 0.0  ;;  %v1358_v22 = vld [vmem:[%s1700_s11] ss:$0 sm:$0xff] }
  0x8f   : > { %v658_v25 = vpop.xlane.xlu0 %657  ;;  %666 = vadd.xlane.f32.xlu1 %v665_v24  ;;  %v627_v32 = vmul.f32 %v1574_v30, %v1574_v30 }
  0x90   : > { %v660_v26 = vmul.f32 %v658_v25, %v624_v18 }
  0x91   : > { %v628_v33 = vsel %vm614_vm0, %v627_v32, 0.0 }
  0x92   : > { %v662_v28 = vsub.f32 %v611_v3, %v660_v26 }
  0x94   : > { %v664_v29 = vmul.f32 %v662_v28, %v662_v28 }
  0x96   : > { %v668_v31 = vsel %vm614_vm0, %v664_v29, 0.0 }
  0x97   : > { %669 = vadd.xlane.f32.xlu2 %v668_v31 }
  0x9f   : > { %629 = vadd.xlane.f32.xlu2 %v628_v33 }
 0x102   : > { %v667_v36 = vpop.xlane.xlu1 %666 }
 0x103   : > { %v671_v37 = vmul.f32 %v667_v36, %v624_v18 }
 0x105   : > { %v673_v40 = vadd.f32 1e-05, %v671_v37 }
 0x107   : > { %1364 = vrsqrt.f32 %v673_v40  ;;  %vm681_vm3 = vweird.f32 %v673_v40 }
 0x10a   : > { %v670_v42 = vpop.xlane.xlu2 %669 }
 0x10b   : > { %v672_v44 = vmul.f32 %v670_v42, %v624_v18 }
 0x10d   : > { %v1365_v45 = vpop.eup %1364  ;;  %v674_v46 = vadd.f32 1e-05, %v672_v44 }
 0x10e   : > { %v676_v47 = vmul.f32 %v1365_v45, %v673_v40  ;;  %vm682_vm2 = vweird.f32 %v1365_v45 }
 0x10f   : > { %1366 = vrsqrt.f32 %v674_v46  ;;  %vm683_vm4 = vmor %vm681_vm3, %vm682_vm2  ;;  %vm691_vm6 = vweird.f32 %v674_v46 }
 0x110   : > { %v677_v48 = vmul.f32 %v1365_v45, %v676_v47 }
 0x112   : > { %v678_v49 = vmul.f32 0.5, %v677_v48  ;;  %v630_v50 = vpop.xlane.xlu2 %629 }
 0x113   : > { %v631_v51 = vmul.f32 %v630_v50, %v624_v18 }
 0x114   : > { %v679_v52 = vsub.f32 1.5, %v678_v49 }
 0x115   : > { %v1367_v53 = vpop.eup %1366  ;;  %v632_v54 = vadd.f32 1e-05, %v631_v51 }
 0x116   : > { %v680_v55 = vmul.f32 %v1365_v45, %v679_v52  ;;  %v686_v56 = vmul.f32 %v1367_v53, %v674_v46  ;;  %vm692_vm5 = vweird.f32 %v1367_v53 }
 0x117   : > { %1368 = vrsqrt.f32 %v632_v54  ;;  %vm693_vm7 = vmor %vm691_vm6, %vm692_vm5  ;;  %vm639_vm8 = vweird.f32 %v632_v54 }
 0x118   : > { %v687_v57 = vmul.f32 %v1367_v53, %v686_v56  ;;  %v684_v58 = vsel %vm683_vm4, %v1365_v45, %v680_v55 }
 0x119   : > { %v695_v62 = vmul.f32 %v684_v58, %v661_v21 }
 0x11a   : > { %v688_v59 = vmul.f32 0.5, %v687_v57 }
 0x11b   : > { %v697_v7 = vmul.f32 %v1356_v63, %v695_v62 }
 0x11c   : > { %v689_v60 = vsub.f32 1.5, %v688_v59 }
 0x11d   : > { %v1369_v61 = vpop.eup %1368  ;;  %v699_v12 = vadd.f32 %v1357_v6, %v697_v7 }
 0x11e   : > { %v690_v0 = vmul.f32 %v1367_v53, %v689_v60  ;;  %v634_v1 = vmul.f32 %v1369_v61, %v632_v54  ;;  %vm640_vm9 = vweird.f32 %v1369_v61 }
 0x11f   : > { %vm641_vm10 = vmor %vm639_vm8, %vm640_vm9 }
 0x120   : > { %v694_v3 = vsel %vm693_vm7, %v1367_v53, %v690_v0  ;;  %v635_v4 = vmul.f32 %v1369_v61, %v634_v1 }
 0x121   : > { %v696_v5 = vmul.f32 %v694_v3, %v662_v28 }
 0x122   : > { %v636_v8 = vmul.f32 0.5, %v635_v4 }
 0x123   : > { %v698_v9 = vmul.f32 %v1356_v63, %v696_v5 }
 0x124   : > { %v637_v10 = vsub.f32 1.5, %v636_v8 }
 0x125   : > { %v700_v13 = vadd.f32 %v1357_v6, %v698_v9 }
 0x126   : > { %v638_v14 = vmul.f32 %v1369_v61, %v637_v10 }
 0x127   : > { %v701_v15 = vpack.c.bf16 %v700_v13, %v699_v12 }
 0x128   : > { %v642_v16 = vsel %vm641_vm10, %v1369_v61, %v638_v14 }
 0x129   : > { %1270 = vmatmul.msk.bf16.vlgmr.msra.gmra.mxu1 %vm614_vm0, %v701_v15  ;;  %1279 = vmatmul.msk.bf16.vlgmr.msra.gmra.mxu2 %vm614_vm0, %v701_v15  ;;  %v643_v17 = vmul.f32 %v642_v16, %v1574_v30  ;;  %v1359_v30 = vld [vmem:[%s1701_s12] ss:$0 sm:$0xff] }
 0x12b   : > { %v647_v18 = vmul.f32 %v1356_v63, %v643_v17 }
 0x12d   : > { %v651_v19 = vadd.f32 %v1357_v6, %v647_v18 }
 0x12f   : > { %v652_v20 = vpack.c.bf16 %v651_v19, %v651_v19 }
 0x131   : > { %1261 = vmatmul.msk.bf16.vlgmr.msra.gmra.mxu0 %vm614_vm0, %v652_v20 }
 0x1a6   : > { %v770_v21 = vpop.f32.mrf.mxu1 }
 0x1a7   : > { %v771_v27 = vadd.f32 %v1358_v22, %v770_v21 }
 0x1ac   : > { %v804_v24 = vpop.f32.mrf.mxu2 }
 0x1ad   : > { %v805_v35 = vadd.f32 %v1359_v30, %v804_v24 }
 0x1ae   : > { %v734_v25 = vpop.f32.mrf.mxu0  ;;  %v772_v26 = vpop.f32.mrf.mxu1 }
 0x1af   : > { %v735_v28 = vadd.f32 %v1360_v23, %v734_v25  ;;  %v773_v29 = vadd.f32 %v1358_v22, %v772_v26 }
 0x1b1   : > { %v818_v31 = vpack.c.bf16 %v735_v28, %v735_v28  ;;  %v819_v32 = vpack.c.bf16 %v773_v29, %v771_v27 }
 0x1b3   : > { %874 = vrot.lane.b32.xlu1 %v818_v31, %s1427_s27  ;;  %940 = vrot.lane.b32.xlu2 %v819_v32, %s1428_s29  ;;  %v826_v33 = vsel %vm821_vm11, %v819_v32, 0 }
 0x1b4   : > { %877 = vrot.lane.b32.xlu0 %v819_v32, %s1427_s27  ;;  %v806_v34 = vpop.f32.mrf.mxu2  ;;  %835 = vmatpush.bf16.xpose.msra.mxu3 %v826_v33 }
 0x1b5   : > { %v807_v36 = vadd.f32 %v1359_v30, %v806_v34 }
 0x1b6   : > { %v736_v37 = vpop.f32.mrf.mxu0 }
 0x1b7   : > { %v1621_v38 = vpack.c.bf16 %v807_v36, %v805_v35 }
 0x1b9   : > { %866 = vmatpush.bf16.msrb.mxu0 %v1621_v38 }
 0x1bb   : > { %1000 = vrot.lane.b32.xlu1 %v818_v31, %s1429_s19  ;;  %938 = vrot.lane.b32.xlu2 %v818_v31, %s1428_s29 }
 0x1bc   : > { %1002 = vrot.lane.b32.xlu0 %v819_v32, %s1429_s19  ;;  %1280 = vmatmul.msk.bf16.vlgmr.msra.gmra.mxu3 %vm821_vm11, %v818_v31 }
 0x20d   : > { %v941_v39 = vpop.permute.xlu2 %940 }
 0x20e   : > { %v946_v40 = vsel %vm821_vm11, %v941_v39, 0 }
 0x20f   : > { %955 = vmatpush.bf16.xpose.msrb.mxu3 %v946_v40 }
 0x215   : > { %v939_v41 = vpop.permute.xlu2 %938 }
 0x216   : > { %1284 = vmatmul.msk.bf16.vlgmr.msrb.gmra.mxu3 %vm821_vm11, %v939_v41 }
 0x225   : > { %v875_v44 = vpop.permute.xlu1 %874 }
 0x226   : > { %v878_v42 = vpop.permute.xlu0 %877 }
 0x227   : > { %v883_v43 = vsel %vm821_vm11, %v878_v42, 0 }
 0x228   : > { %892 = vmatpush.bf16.xpose.msrb.mxu1 %v883_v43 }
 0x22d   : > { %v1001_v47 = vpop.permute.xlu1 %1000 }
 0x22e   : > { %v1003_v45 = vpop.permute.xlu0 %1002 }
 0x22f   : > { %v1008_v46 = vsel %vm821_vm11, %v1003_v45, 0  ;;  %1282 = vmatmul.msk.bf16.vlgmr.msrb.gmra.mxu1 %vm821_vm11, %v875_v44 }
 0x230   : > { %1017 = vmatpush.bf16.xpose.msra.mxu1 %v1008_v46 }
 0x23f   : > { %v837_v48 = vpop.f32.mrf.mxu3  ;;  %1286 = vmatmul.msk.bf16.vlgmr.msra.gmra.mxu1 %vm821_vm11, %v1001_v47 }
 0x240   : > { %v841_v49 = vmul.f32 0.35355338, %v837_v48 }
 0x242   : > { %v842_v50 = vadd.f32 %v841_v49, %v1570_v11 }
 0x244   : > { %v844_v51 = vsel %vm843_vm12, %v842_v50, -inf }
 0x245   : > { %845 = vmax.xlane.f32.xlu2 %v844_v51 }
 0x247   : > { %v839_v52 = vpop.f32.mrf.mxu3 }
 0x248   : > { %v1307_v52 = vld [vmem:[%s1702_s13 + $0x8] sm:$0xff] }
 0x249   : > { %1093 = vmatpush.bf16.msra.mxu3 %v1307_v52 }
 0x299   : > { %v957_v53 = vpop.f32.mrf.mxu3 }
 0x29a   : > { %v961_v58 = vmul.f32 0.35355338, %v957_v53  ;;  %v1306_v53 = vld [vmem:[%s1702_s13] sm:$0xff] }
 0x29b   : > { %1094 = vmatpush.bf16.msra.mxu3 %v1306_v53 }
 0x29c   : > { %v962_v61 = vadd.f32 %v961_v58, %v1570_v11 }
 0x29e   : > { %v963_v0 = vsel %vm843_vm12, %v962_v61, -inf }
 0x2a1   : > { %v959_v54 = vpop.f32.mrf.mxu3 }
 0x2ac   : > { %v894_v55 = vpop.f32.mrf.mxu1 }
 0x2ad   : > { %v898_v56 = vmul.f32 0.35355338, %v894_v55 }
 0x2af   : > { %v899_v57 = vadd.f32 %v898_v56, %v1570_v11 }
 0x2b1   : > { %v900_v59 = vsel %vm843_vm12, %v899_v57, -inf }
 0x2b2   : > { %901 = vmax.xlane.f32.xlu0 %v900_v59  ;;  %v1361_v59 = vld [vmem:[%s1703_s14] ss:$0 sm:$0xff] }
 0x2b4   : > { %v896_v60 = vpop.f32.mrf.mxu1 }
 0x2b8   : > { %v846_v62 = vpop.xlane.xlu2 %845 }
 0x2b9   : > { %v847_v63 = vsub.f32 %v842_v50, %v846_v62 }
 0x2ba   : > { %964 = vmax.xlane.f32.xlu0 %v963_v0 }
 0x2bb   : > { %v848_v1 = vmul.f32 1.442695, %v847_v63 }
 0x2bc   : > { %v1019_v3 = vpop.f32.mrf.mxu1 }
 0x2bd   : > { %v1023_v4 = vmul.f32 0.35355338, %v1019_v3  ;;  %1370 = vpow2.f32 %v848_v1 }
 0x2bf   : > { %v1024_v5 = vadd.f32 %v1023_v4, %v1570_v11 }
 0x2c1   : > { %v1025_v6 = vsel %vm843_vm12, %v1024_v5, -inf }
 0x2c2   : > { %1026 = vmax.xlane.f32.xlu1 %v1025_v6 }
 0x2c3   : > { %v1371_v8 = vpop.eup %1370 }
 0x2c4   : > { %v1021_v7 = vpop.f32.mrf.mxu1  ;;  %v850_v9 = vsel %vm843_vm12, %v1371_v8, 0.0 }
 0x2ca   : > { %851 = vadd.xlane.f32.xlu1 %v850_v9 }
 0x2ce   : > { %913 = vrot.lane.b32.xlu0 %v1621_v38, %s1427_s27  ;;  %s607_s27 = scalar_lea.vmem %s1704_s15, %s1245_s21 }
 0x325   : > { %v902_v10 = vpop.xlane.xlu0 %901 }
 0x326   : > { %v903_v12 = vsub.f32 %v899_v57, %v902_v10 }
 0x328   : > { %v904_v13 = vmul.f32 1.442695, %v903_v12 }
 0x32a   : > { %1372 = vpow2.f32 %v904_v13 }
 0x32d   : > { %v965_v14 = vpop.xlane.xlu0 %964 }
 0x32e   : > { %v966_v15 = vsub.f32 %v962_v61, %v965_v14 }
 0x330   : > { %v1373_v16 = vpop.eup %1372  ;;  %v967_v11 = vmul.f32 1.442695, %v966_v15 }
 0x331   : > { %v906_v17 = vsel %vm843_vm12, %v1373_v16, 0.0 }
 0x332   : > { %1374 = vpow2.f32 %v967_v11  ;;  %907 = vadd.xlane.f32.xlu2 %v906_v17 }
 0x335   : > { %v1027_v18 = vpop.xlane.xlu1 %1026 }
 0x336   : > { %v1028_v19 = vsub.f32 %v1024_v5, %v1027_v18 }
 0x338   : > { %v1375_v20 = vpop.eup %1374  ;;  %v1029_v21 = vmul.f32 1.442695, %v1028_v19 }
 0x339   : > { %v969_v22 = vsel %vm843_vm12, %v1375_v20, 0.0 }
 0x33a   : > { %1376 = vpow2.f32 %v1029_v21  ;;  %970 = vadd.xlane.f32.xlu1 %v969_v22 }
 0x33d   : > { %v852_v23 = vpop.xlane.xlu1 %851 }
 0x33e   : > { %1378 = vrcp.f32 %v852_v23 }
 0x340   : > { %v1377_v24 = vpop.eup %1376  ;;  %v914_v25 = vpop.permute.xlu0 %913 }
 0x341   : > { %926 = vmatpush.bf16.msrb.mxu2 %v914_v25  ;;  %v1031_v26 = vsel %vm843_vm12, %v1377_v24, 0.0 }
 0x342   : > { %1032 = vadd.xlane.f32.xlu2 %v1031_v26 }
 0x344   : > { %v1379_v27 = vpop.eup %1378 }
 0x345   : > { %v854_v28 = vmul.f32 %v1379_v27, %v1371_v8 }
 0x347   : > { %v855_v29 = vpack.c.bf16 %v854_v28, %v854_v28 }
 0x349   : > { %1281 = vmatmul.msk.bf16.vlgmr.msrb.gmra.mxu0 %vm843_vm12, %v855_v29 }
 0x353   : > { %975 = vrot.lane.b32.xlu1 %v1621_v38, %s1428_s29 }
 0x35a   : > { %1037 = vrot.lane.b32.xlu2 %v1621_v38, %s1429_s19 }
 0x3a5   : > { %v908_v30 = vpop.xlane.xlu2 %907 }
 0x3a6   : > { %1380 = vrcp.f32 %v908_v30 }
 0x3ac   : > { %v1381_v31 = vpop.eup %1380 }
 0x3ad   : > { %v910_v32 = vmul.f32 %v1381_v31, %v1373_v16  ;;  %v971_v35 = vpop.xlane.xlu1 %970 }
 0x3af   : > { %v911_v33 = vpack.c.bf16 %v910_v32, %v910_v32 }
 0x3b1   : > { %1283 = vmatmul.msk.bf16.vlgmr.msrb.gmra.mxu2 %vm843_vm12, %v911_v33 }
 0x3b5   : > { %v1033_v34 = vpop.xlane.xlu2 %1032 }
 0x3b6   : > { %1382 = vrcp.f32 %v1033_v34 }
 0x3b7   : > { %1384 = vrcp.f32 %v971_v35 }
 0x3bc   : > { %v1383_v36 = vpop.eup %1382 }
 0x3bd   : > { %v1035_v37 = vmul.f32 %v1383_v36, %v1377_v24  ;;  %v1038_v39 = vpop.permute.xlu2 %1037  ;;  %v1385_v41 = vpop.eup %1384 }
 0x3be   : > { %1050 = vmatpush.bf16.msra.mxu2 %v1038_v39  ;;  %v973_v38 = vmul.f32 %v1385_v41, %v1375_v20 }
 0x3bf   : > { %v1036_v40 = vpack.c.bf16 %v1035_v37, %v1035_v37 }
 0x3c0   : > { %v974_v44 = vpack.c.bf16 %v973_v38, %v973_v38 }
 0x3c1   : > { %1287 = vmatmul.msk.bf16.vlgmr.msra.gmra.mxu2 %vm843_vm12, %v1036_v40 }
 0x3c5   : > { %v976_v42 = vpop.permute.xlu1 %975 }
 0x3c6   : > { %v868_v43 = vpop.f32.mrf.mxu0  ;;  %988 = vmatpush.bf16.msra.mxu0 %v976_v42 }
 0x3c7   : > { %872 = vst.msk [vmem:[#allocation2] sm:$0xff] %vm821_vm11, %v868_v43 }
 0x3c9   : > { %1285 = vmatmul.msk.bf16.vlgmr.msra.gmra.mxu0 %vm843_vm12, %v974_v44 }
 0x3ce   : > { %v870_v45 = vpop.f32.mrf.mxu0 }
 0x434   : > { %v928_v46 = vpop.f32.mrf.mxu2 }
 0x435   : > { %933 = vrot.lane.b32.xlu0 %v928_v46, %s1430_s25 }
 0x43c   : > { %v930_v47 = vpop.f32.mrf.mxu2 }
 0x444   : > { %v1052_v48 = vpop.f32.mrf.mxu2 }
 0x445   : > { %1057 = vrot.lane.b32.xlu2 %v1052_v48, %s1431_s30 }
 0x446   : > { %v990_v49 = vpop.f32.mrf.mxu0 }
 0x447   : > { %995 = vrot.lane.b32.xlu0 %v990_v49, %s1432_s17 }
 0x44c   : > { %v1054_v50 = vpop.f32.mrf.mxu2 }
 0x44e   : > { %v992_v51 = vpop.f32.mrf.mxu0 }
 0x49f   : > { %v1058_v56 = vpop.permute.xlu2 %1057 }
 0x4a7   : > { %v934_v54 = vpop.permute.xlu0 %933 }
 0x4a8   : > { %937 = vst.msk [vmem:[#allocation2] sm:$0xff] %vm936_vm13, %v934_v54 }
 0x4b9   : > { %v996_v55 = vpop.permute.xlu0 %995 }
 0x4ba   : > { %999 = vst.msk [vmem:[#allocation2] sm:$0xff] %vm998_vm14, %v996_v55 }
 0x4bb   : > { %1061 = vst.msk [vmem:[#allocation2] sm:$0xff] %vm1060_vm15, %v1058_v56 }
 0x4c2   : > { %v1062_v57 = vld [vmem:[#allocation2] sm:$0xff] }
 0x4c3   : > { %v1063_v58 = vpack.c.bf16 %v1062_v57, %v1062_v57 }
 0x4c5   : > { %1296 = vmatmul.msk.bf16.vlgmr.msra.gmra.mxu3 %vm614_vm0, %v1063_v58 }
 0x548   : > { %v1096_v60 = vpop.f32.mrf.mxu3 }
 0x549   : > { %v1097_v61 = vadd.f32 %v1361_v59, %v1096_v60 }
 0x54b   : > { %v1100_v62 = vadd.f32 %v1097_v61, %v1565_v2 }
 0x54d   : > { %1101 = vst.msk [vmem:[%s607_s27] sm:$0xff] %vm614_vm0, %v1100_v62 }
 0x550   : > { %v1098_v63 = vpop.f32.mrf.mxu3 }
 0x551 PF: > { %s1715_s29 = sld [smem:[#allocation5_spill]] }
 0x552   : > { %s1716_s18 = sld [smem:[#allocation3_spill]] }
 0x553   : > { %s1717_s19 = sld [smem:[#allocation4_spill]] }
 0x554   : > { %s1718_s20 = sld [smem:[#allocation6_spill]] }
 0x555   : > { %s1719_s21 = sld [smem:[#allocation7_spill]] }
 0x557   : > { %s25_s22 = sadd.s32 1, %s1715_s29  }
 0x558   : > { %p22_p7 = scmp.ge.s32.totalorder %s25_s22, 6  }
 0x55a   :  { %24 = sbr.rel (!%p22_p7) target bundleno = 3 (0x3), region = 122 }

// kernel: forward.9
= control target key start
LH: loop header
LB: loop body
LE: loop exit
PB: predicated region body
PF: predicated region fallthrough
CT: control target
= control target key end

     0   :  { %vm33_vm0 = vcmask 261120   ;;  %v509_v8 = vmov 32.0   ;;  %s772_s0 = inlined_call_operand.vmem [shape: f32[32,32], index: 0, kind: input, shape index: {}]   ;;  %s773_s1 = inlined_call_operand.vmem [shape: f32[1,32], index: 1, kind: input, shape index: {}]   ;;  %s774_s2 = inlined_call_operand.vmem [shape: f32[1,32], index: 2, kind: input, shape index: {}]   ;;  %s775_s4 = inlined_call_operand.vmem [shape: f32[1,64], index: 4, kind: input, shape index: {}]   ;;  %s776_s3 = inlined_call_operand.vmem [shape: bf16[32,64], index: 3, kind: input, shape index: {}]   ;;  %s777_s6 = inlined_call_operand.vmem [shape: f32[1,32], index: 6, kind: input, shape index: {}]   ;;  %s778_s5 = inlined_call_operand.vmem [shape: bf16[64,32], index: 5, kind: input, shape index: {}]   ;;  %s779_s7 = inlined_call_operand.vmem [shape: f32[32,32], index: 7, kind: output, shape index: {}]  }
   0x1   :  { %v553_v0 = vld [vmem:[%s772_s0 + $0x10] sm:$0xff]  ;;  %v558_v1 = vld [vmem:[%s772_s0] sm:$0xff]  ;;  %v567_v4 = vld [vmem:[%s772_s0 + $0x18] sm:$0xff]  ;;  %491 = vrcp.f32 %v509_v8 }
   0x2   :  { %v40_v2 = vsel %vm33_vm0, %v553_v0, 0.0  ;;  %v34_v3 = vsel %vm33_vm0, %v558_v1, 0.0  ;;  %v572_v5 = vld [vmem:[%s772_s0 + $0x8] sm:$0xff]  ;;  %v43_v6 = vsel %vm33_vm0, %v567_v4, 0.0  ;;  %v474_v40 = vld [vmem:[%s776_s3] sm:$0xff] }
   0x3   :  { %41 = vadd.xlane.f32.xlu0 %v40_v2  ;;  %35 = vadd.xlane.f32.xlu1 %v34_v3  ;;  %v37_v7 = vsel %vm33_vm0, %v572_v5, 0.0  ;;  %v475_v35 = vld [vmem:[%s776_s3 + $0x8] sm:$0xff] }
   0x4   :  { %177 = vmatpush.bf16.msra.mxu0 %v475_v35  ;;  %480 = vmatpush.bf16.msra.mxu3 %v475_v35 }
   0x7   :  { %v492_v9 = vpop.eup %491 }
   0x8   :  { %v47_v10 = vmul.f32 32.0, %v492_v9  ;;  %vm51_vm1 = vweird.f32 %v492_v9  ;;  %178 = vmatpush.bf16.msra.mxu0 %v474_v40  ;;  %481 = vmatpush.bf16.msra.mxu3 %v474_v40 }
   0xa   :  { %v48_v11 = vsub.f32 1.0, %v47_v10 }
   0xb   :  { %44 = vadd.xlane.f32.xlu0 %v43_v6  ;;  %38 = vadd.xlane.f32.xlu1 %v37_v7 }
   0xc   :  { %v49_v12 = vmul.f32 %v492_v9, %v48_v11 }
   0xe   :  { %v50_v13 = vadd.f32 %v492_v9, %v49_v12 }
  0x10   :  { %v52_v14 = vsel %vm51_vm1, %v492_v9, %v50_v13 }
  0x76   :  { %v42_v15 = vpop.xlane.xlu0 %41  ;;  %v36_v16 = vpop.xlane.xlu1 %35 }
  0x77   :  { %v55_v17 = vmul.f32 %v52_v14, %v42_v15  ;;  %v53_v18 = vmul.f32 %v52_v14, %v36_v16 }
  0x79   :  { %v579_v19 = vsub.f32 %v553_v0, %v55_v17  ;;  %v582_v20 = vsub.f32 %v558_v1, %v53_v18 }
  0x7b   :  { %v63_v21 = vmul.f32 %v579_v19, %v579_v19  ;;  %v61_v22 = vmul.f32 %v582_v20, %v582_v20 }
  0x7d   :  { %v71_v23 = vsel %vm33_vm0, %v63_v21, 0.0  ;;  %v65_v24 = vsel %vm33_vm0, %v61_v22, 0.0 }
  0x7e   :  { %72 = vadd.xlane.f32.xlu2 %v71_v23  ;;  %v45_v25 = vpop.xlane.xlu0 %44  ;;  %66 = vadd.xlane.f32.xlu0 %v65_v24  ;;  %v39_v26 = vpop.xlane.xlu1 %38 }
  0x7f   :  { %v56_v27 = vmul.f32 %v52_v14, %v45_v25  ;;  %v54_v28 = vmul.f32 %v52_v14, %v39_v26 }
  0x81   :  { %v591_v29 = vsub.f32 %v567_v4, %v56_v27  ;;  %v594_v30 = vsub.f32 %v572_v5, %v54_v28 }
  0x83   :  { %v64_v31 = vmul.f32 %v591_v29, %v591_v29  ;;  %v62_v32 = vmul.f32 %v594_v30, %v594_v30 }
  0x85   :  { %v74_v33 = vsel %vm33_vm0, %v64_v31, 0.0  ;;  %v68_v34 = vsel %vm33_vm0, %v62_v32, 0.0 }
  0x86   :  { %75 = vadd.xlane.f32.xlu2 %v74_v33  ;;  %69 = vadd.xlane.f32.xlu1 %v68_v34 }
  0xf1   :  { %v73_v36 = vpop.xlane.xlu2 %72  ;;  %v67_v37 = vpop.xlane.xlu0 %66 }
  0xf2   :  { %v79_v38 = vmul.f32 %v73_v36, %v52_v14  ;;  %v77_v39 = vmul.f32 %v67_v37, %v52_v14 }
  0xf4   :  { %v83_v41 = vadd.f32 1e-05, %v79_v38  ;;  %v81_v42 = vadd.f32 1e-05, %v77_v39 }
  0xf6   :  { %493 = vrsqrt.f32 %v83_v41  ;;  %vm91_vm3 = vweird.f32 %v81_v42  ;;  %vm111_vm5 = vweird.f32 %v83_v41 }
  0xf7   :  { %495 = vrsqrt.f32 %v81_v42 }
  0xf9   :  { %v76_v43 = vpop.xlane.xlu2 %75  ;;  %v70_v44 = vpop.xlane.xlu1 %69 }
  0xfa   :  { %v80_v45 = vmul.f32 %v76_v43, %v52_v14  ;;  %v78_v46 = vmul.f32 %v70_v44, %v52_v14  ;;  %v487_v14 = vld [vmem:[%s773_s1] ss:$0 sm:$0xff] }
  0xfc   :  { %v494_v47 = vpop.eup %493  ;;  %v84_v48 = vadd.f32 1e-05, %v80_v45  ;;  %v82_v49 = vadd.f32 1e-05, %v78_v46 }
  0xfd   :  { %v496_v50 = vpop.eup %495  ;;  %v106_v51 = vmul.f32 %v494_v47, %v83_v41  ;;  %vm112_vm2 = vweird.f32 %v494_v47 }
  0xfe   :  { %v86_v52 = vmul.f32 %v496_v50, %v81_v42  ;;  %497 = vrsqrt.f32 %v84_v48  ;;  %vm92_vm4 = vweird.f32 %v496_v50  ;;  %vm113_vm6 = vmor %vm111_vm5, %vm112_vm2  ;;  %vm101_vm9 = vweird.f32 %v82_v49 }
  0xff   :  { %v107_v53 = vmul.f32 %v494_v47, %v106_v51  ;;  %499 = vrsqrt.f32 %v82_v49  ;;  %vm93_vm7 = vmor %vm91_vm3, %vm92_vm4  ;;  %vm121_vm11 = vweird.f32 %v84_v48 }
 0x100   :  { %v87_v54 = vmul.f32 %v496_v50, %v86_v52 }
 0x101   :  { %v108_v55 = vmul.f32 0.5, %v107_v53 }
 0x102   :  { %v88_v56 = vmul.f32 0.5, %v87_v54 }
 0x103   :  { %v109_v57 = vsub.f32 1.5, %v108_v55 }
 0x104   :  { %v498_v58 = vpop.eup %497  ;;  %v89_v59 = vsub.f32 1.5, %v88_v56 }
 0x105   :  { %v500_v60 = vpop.eup %499  ;;  %v110_v61 = vmul.f32 %v494_v47, %v109_v57  ;;  %v116_v62 = vmul.f32 %v498_v58, %v84_v48  ;;  %vm122_vm8 = vweird.f32 %v498_v58 }
 0x106   :  { %v90_v63 = vmul.f32 %v496_v50, %v89_v59  ;;  %v96_v2 = vmul.f32 %v500_v60, %v82_v49  ;;  %vm102_vm10 = vweird.f32 %v500_v60  ;;  %vm123_vm12 = vmor %vm121_vm11, %vm122_vm8 }
 0x107   :  { %v117_v3 = vmul.f32 %v498_v58, %v116_v62  ;;  %v114_v7 = vsel %vm113_vm6, %v494_v47, %v110_v61  ;;  %vm103_vm13 = vmor %vm101_vm9, %vm102_vm10 }
 0x108   :  { %v97_v6 = vmul.f32 %v500_v60, %v96_v2  ;;  %v94_v9 = vsel %vm93_vm7, %v496_v50, %v90_v63  ;;  %v127_v12 = vmul.f32 %v114_v7, %v579_v19  ;;  %v488_v19 = vld [vmem:[%s774_s2] ss:$0 sm:$0xff] }
 0x109   :  { %v118_v8 = vmul.f32 0.5, %v117_v3  ;;  %v125_v15 = vmul.f32 %v94_v9, %v582_v20 }
 0x10a   :  { %v98_v10 = vmul.f32 0.5, %v97_v6  ;;  %v134_v23 = vmul.f32 %v487_v14, %v127_v12 }
 0x10b   :  { %v119_v11 = vsub.f32 1.5, %v118_v8  ;;  %v132_v25 = vmul.f32 %v487_v14, %v125_v15 }
 0x10c   :  { %v99_v13 = vsub.f32 1.5, %v98_v10  ;;  %v141_v20 = vadd.f32 %v488_v19, %v134_v23 }
 0x10d   :  { %v120_v16 = vmul.f32 %v498_v58, %v119_v11  ;;  %v139_v31 = vadd.f32 %v488_v19, %v132_v25  ;;  %v479_v25 = vld [vmem:[%s778_s5 + $0x18] sm:$0xff] }
 0x10e   :  { %v100_v17 = vmul.f32 %v500_v60, %v99_v13  ;;  %415 = vmatpush.bf16.msra.mxu1 %v479_v25  ;;  %482 = vmatpush.bf16.msra.mxu2 %v479_v25 }
 0x10f   :  { %v124_v18 = vsel %vm123_vm12, %v498_v58, %v120_v16  ;;  %vm404_vm12 = vcmask 523264  }
 0x110   :  { %v128_v21 = vmul.f32 %v124_v18, %v591_v29  ;;  %v104_v22 = vsel %vm103_vm13, %v500_v60, %v100_v17  ;;  %v489_v29 = vld [vmem:[%s775_s4] ss:$0 sm:$0xff] }
 0x111   :  { %v126_v24 = vmul.f32 %v104_v22, %v594_v30 }
 0x112   :  { %v135_v26 = vmul.f32 %v487_v14, %v128_v21 }
 0x113   :  { %v133_v27 = vmul.f32 %v487_v14, %v126_v24 }
 0x114   :  { %v142_v28 = vadd.f32 %v488_v19, %v135_v26 }
 0x115   :  { %v140_v32 = vadd.f32 %v488_v19, %v133_v27 }
 0x116   :  { %v144_v33 = vpack.c.bf16 %v142_v28, %v141_v20 }
 0x117   :  { %v143_v34 = vpack.c.bf16 %v140_v32, %v139_v31 }
 0x118   :  { %451 = vmatmul.msk.bf16.vlgmr.msra.gmra.mxu3 %vm33_vm0, %v144_v33 }
 0x119   :  { %450 = vmatmul.msk.bf16.vlgmr.msra.gmra.mxu0 %vm33_vm0, %v143_v34 }
 0x196   :  { %v180_v35 = vpop.f32.mrf.mxu0 }
 0x197   :  { %v623_v36 = vadd.f32 %v489_v29, %v180_v35  ;;  %v478_v35 = vld [vmem:[%s778_s5 + $0x10] sm:$0xff] }
 0x198   :  { %416 = vmatpush.bf16.msra.mxu1 %v478_v35  ;;  %483 = vmatpush.bf16.msra.mxu2 %v478_v35 }
 0x199   :  { %v626_v30 = vmul.f32 0.70710677, %v623_v36 }
 0x19b   :  { %v198_v37 = vmul.f32 %v626_v30, %v626_v30  ;;  %v185_v38 = vpop.f32.mrf.mxu3 }
 0x19c   :  { %v630_v39 = vadd.f32 %v489_v29, %v185_v38 }
 0x19d   :  { %v632_v40 = vmin.f32 %v198_v37, 16.0 }
 0x19e   :  { %v635_v41 = vmul.f32 0.70710677, %v630_v39  ;;  %v182_v42 = vpop.f32.mrf.mxu0 }
 0x19f   :  { %v200_v43 = vmul.f32 2.1237322e-06, %v632_v40  ;;  %v211_v44 = vmul.f32 3.8918573e-05, %v632_v40  ;;  %v639_v45 = vadd.f32 %v489_v29, %v182_v42 }
 0x1a0   :  { %v278_v46 = vmul.f32 %v635_v41, %v635_v41 }
 0x1a1   :  { %v212_v47 = vadd.f32 0.001143296, %v211_v44  ;;  %v646_v49 = vmul.f32 0.70710677, %v639_v45  ;;  %v201_v50 = vadd.f32 0.00028619796, %v200_v43 }
 0x1a2   :  { %v643_v48 = vmin.f32 %v278_v46, 16.0 }
 0x1a3   :  { %v213_v51 = vmul.f32 %v212_v47, %v632_v40  ;;  %v187_v52 = vpop.f32.mrf.mxu3  ;;  %v238_v54 = vmul.f32 %v646_v49, %v646_v49  ;;  %v202_v59 = vmul.f32 %v201_v50, %v632_v40 }
 0x1a4   :  { %v291_v53 = vmul.f32 3.8918573e-05, %v643_v48  ;;  %v652_v55 = vadd.f32 %v489_v29, %v187_v52  ;;  %v280_v7 = vmul.f32 2.1237322e-06, %v643_v48 }
 0x1a5   :  { %v214_v56 = vadd.f32 0.014752088, %v213_v51  ;;  %v654_v58 = vmin.f32 %v238_v54, 16.0  ;;  %v203_v10 = vadd.f32 0.0036580483, %v202_v59  ;;  %v477_v51 = vld [vmem:[%s778_s5 + $0x8] sm:$0xff] }
 0x1a6   :  { %v292_v57 = vadd.f32 0.001143296, %v291_v53  ;;  %v659_v61 = vmul.f32 0.70710677, %v652_v55  ;;  %v281_v17 = vadd.f32 0.00028619796, %v280_v7  ;;  %417 = vmatpush.bf16.msra.mxu1 %v477_v51  ;;  %484 = vmatpush.bf16.msra.mxu2 %v477_v51 }
 0x1a7   :  { %v215_v60 = vmul.f32 %v214_v56, %v632_v40  ;;  %v240_v63 = vmul.f32 2.1237322e-06, %v654_v58  ;;  %v251_v2 = vmul.f32 3.8918573e-05, %v654_v58  ;;  %v204_v22 = vmul.f32 %v203_v10, %v632_v40 }
 0x1a8   :  { %v293_v62 = vmul.f32 %v292_v57, %v643_v48  ;;  %v318_v6 = vmul.f32 %v659_v61, %v659_v61  ;;  %v282_v28 = vmul.f32 %v281_v17, %v643_v48 }
 0x1a9   :  { %v216_v3 = vadd.f32 0.112945676, %v215_v60  ;;  %v241_v9 = vadd.f32 0.00028619796, %v240_v63  ;;  %v252_v12 = vadd.f32 0.001143296, %v251_v2 }
 0x1aa   :  { %v294_v8 = vadd.f32 0.014752088, %v293_v62  ;;  %v670_v16 = vmin.f32 %v318_v6, 16.0  ;;  %v205_v33 = vadd.f32 0.05243302, %v204_v22  ;;  %v476_v6 = vld [vmem:[%s778_s5] sm:$0xff] }
 0x1ab   :  { %v217_v11 = vmul.f32 %v216_v3, %v632_v40  ;;  %v253_v15 = vmul.f32 %v252_v12, %v654_v58  ;;  %v242_v21 = vmul.f32 %v241_v9, %v654_v58  ;;  %v283_v42 = vadd.f32 0.0036580483, %v282_v28  ;;  %418 = vmatpush.bf16.msra.mxu1 %v476_v6  ;;  %485 = vmatpush.bf16.msra.mxu2 %v476_v6 }
 0x1ac   :  { %v295_v13 = vmul.f32 %v294_v8, %v643_v48  ;;  %v320_v20 = vmul.f32 2.1237322e-06, %v670_v16  ;;  %v331_v34 = vmul.f32 3.8918573e-05, %v670_v16  ;;  %v206_v46 = vmul.f32 %v205_v33, %v632_v40 }
 0x1ad   :  { %v218_v14 = vadd.f32 0.4994258, %v217_v11  ;;  %v254_v23 = vadd.f32 0.014752088, %v253_v15  ;;  %v243_v32 = vadd.f32 0.0036580483, %v242_v21  ;;  %v284_v57 = vmul.f32 %v283_v42, %v643_v48 }
 0x1ae   :  { %v296_v18 = vadd.f32 0.112945676, %v295_v13  ;;  %v321_v38 = vadd.f32 0.00028619796, %v320_v20  ;;  %v332_v50 = vadd.f32 0.001143296, %v331_v34 }
 0x1af   :  { %v219_v19 = vmul.f32 %v218_v14, %v632_v40  ;;  %v255_v27 = vmul.f32 %v254_v23, %v654_v58  ;;  %v244_v44 = vmul.f32 %v243_v32, %v654_v58  ;;  %v207_v62 = vadd.f32 0.18741608, %v206_v46 }
 0x1b0   :  { %v297_v24 = vmul.f32 %v296_v18, %v643_v48  ;;  %v322_v54 = vmul.f32 %v321_v38, %v670_v16  ;;  %v333_v60 = vmul.f32 %v332_v50, %v670_v16  ;;  %v285_v11 = vadd.f32 0.05243302, %v284_v57 }
 0x1b1   :  { %v679_v26 = vadd.f32 1.0, %v219_v19  ;;  %v256_v37 = vadd.f32 0.112945676, %v255_v27  ;;  %v245_v59 = vadd.f32 0.05243302, %v244_v44  ;;  %v208_v14 = vmul.f32 %v207_v62, %v632_v40 }
 0x1b2   :  { %v298_v31 = vadd.f32 0.4994258, %v297_v24  ;;  %v334_v3 = vadd.f32 0.014752088, %v333_v60  ;;  %v323_v8 = vadd.f32 0.0036580483, %v322_v54  ;;  %v286_v23 = vmul.f32 %v285_v11, %v643_v48 }
 0x1b3   :  { %501 = vrcp.f32 %v679_v26  ;;  %v257_v47 = vmul.f32 %v256_v37, %v654_v58  ;;  %v246_v12 = vmul.f32 %v245_v59, %v654_v58  ;;  %v232_v18 = vand.u32 2147483648, %v679_v26 }
 0x1b4   :  { %v299_v29 = vmul.f32 %v298_v31, %v643_v48  ;;  %v335_v13 = vmul.f32 %v334_v3, %v670_v16  ;;  %vm226_vm15 = vweird.f32 %v679_v26  ;;  %v230_v21 = vand.u32 2147483647, %v679_v26 }
 0x1b5   :  { %v258_v53 = vadd.f32 0.4994258, %v257_v47  ;;  %v324_v22 = vmul.f32 %v323_v8, %v670_v16  ;;  %v247_v40 = vadd.f32 0.18741608, %v246_v12  ;;  %v209_v24 = vadd.f32 1.1283791, %v208_v14 }
 0x1b6   :  { %v690_v43 = vadd.f32 1.0, %v299_v29  ;;  %v336_v19 = vadd.f32 0.112945676, %v335_v13  ;;  %v233_v28 = vor.u32 1.1754944e-38, %v232_v18  ;;  %vm231_vm2 = vcmp.eq.f32.partialorder %v230_v21, 8.507059e+37 }
 0x1b7   :  { %v259_v63 = vmul.f32 %v258_v53, %v654_v58  ;;  %v325_v32 = vadd.f32 0.05243302, %v324_v22  ;;  %v210_v35 = vmul.f32 %v209_v24, %v626_v30  ;;  %v287_v37 = vadd.f32 0.18741608, %v286_v23 }
 0x1b8   :  { %503 = vrcp.f32 %v690_v43  ;;  %v337_v20 = vmul.f32 %v336_v19, %v670_v16  ;;  %vm306_vm5 = vweird.f32 %v690_v43  ;;  %v310_v60 = vand.u32 2147483647, %v690_v43 }
 0x1b9   :  { %v502_v52 = vpop.eup %501  ;;  %v707_v7 = vadd.f32 1.0, %v259_v63  ;;  %v326_v50 = vmul.f32 %v325_v32, %v670_v16  ;;  %v288_v54 = vmul.f32 %v287_v37, %v643_v48  ;;  %v191_v18 = vmul.f32 0.5, %v639_v45 }
 0x1ba   :  { %v222_v56 = vmul.f32 %v502_v52, %v679_v26  ;;  %vm227_vm14 = vweird.f32 %v502_v52  ;;  %v338_v33 = vadd.f32 0.4994258, %v337_v20  ;;  %v248_v26 = vmul.f32 %v247_v40, %v654_v58 }
 0x1bb   :  { %505 = vrcp.f32 %v707_v7  ;;  %vm228_vm1 = vmor %vm226_vm15, %vm227_vm14  ;;  %v272_v47 = vand.u32 2147483648, %v707_v7  ;;  %v270_v58 = vand.u32 2147483647, %v707_v7  ;;  %vm266_vm6 = vweird.f32 %v707_v7 }
 0x1bc   :  { %v223_v2 = vsub.f32 1.0, %v222_v56  ;;  %v339_v42 = vmul.f32 %v338_v33, %v670_v16  ;;  %v312_v56 = vand.u32 2147483648, %v690_v43  ;;  %v327_v63 = vadd.f32 0.18741608, %v326_v50 }
 0x1bd   :  { %v273_v62 = vor.u32 1.1754944e-38, %v272_v47  ;;  %vm271_vm9 = vcmp.eq.f32.partialorder %v270_v58, 8.507059e+37  ;;  %v289_v3 = vadd.f32 1.1283791, %v288_v54  ;;  %vm311_vm10 = vcmp.eq.f32.partialorder %v310_v60, 8.507059e+37 }
 0x1be   :  { %v709_v9 = vpop.eup %503  ;;  %v224_v10 = vmul.f32 %v502_v52, %v223_v2  ;;  %v340_v51 = vadd.f32 1.0, %v339_v42 }
 0x1bf   :  { %v302_v15 = vmul.f32 %v709_v9, %v690_v43  ;;  %vm307_vm4 = vweird.f32 %v709_v9 }
 0x1c0   :  { %v225_v17 = vadd.f32 %v502_v52, %v224_v10  ;;  %507 = vrcp.f32 %v340_v51  ;;  %vm308_vm8 = vmor %vm306_vm5, %vm307_vm4  ;;  %v313_v10 = vor.u32 1.1754944e-38, %v312_v56  ;;  %v352_v40 = vand.u32 2147483648, %v340_v51 }
 0x1c1   :  { %v303_v27 = vsub.f32 1.0, %v302_v15  ;;  %v506_v31 = vpop.eup %505  ;;  %vm346_vm13 = vweird.f32 %v340_v51 }
 0x1c2   :  { %v229_v25 = vsel %vm228_vm1, %v502_v52, %v225_v17  ;;  %v262_v29 = vmul.f32 %v506_v31, %v707_v7  ;;  %v249_v52 = vadd.f32 1.1283791, %v248_v26  ;;  %vm267_vm3 = vweird.f32 %v506_v31 }
 0x1c3   :  { %v234_v34 = vsel %vm231_vm2, %v233_v28, %v229_v25  ;;  %v304_v38 = vmul.f32 %v709_v9, %v303_v27  ;;  %vm268_vm7 = vmor %vm266_vm6, %vm267_vm3  ;;  %v328_v7 = vmul.f32 %v327_v63, %v670_v16  ;;  %v190_v17 = vmul.f32 0.5, %v623_v36 }
 0x1c4   :  { %v263_v44 = vsub.f32 1.0, %v262_v29  ;;  %v235_v46 = vmul.f32 %v234_v34, %v210_v35  ;;  %v250_v48 = vmul.f32 %v249_v52, %v646_v49  ;;  %v290_v49 = vmul.f32 %v289_v3, %v635_v41 }
 0x1c5   :  { %v305_v30 = vadd.f32 %v709_v9, %v304_v38  ;;  %v329_v23 = vadd.f32 1.1283791, %v328_v7  ;;  %v350_v27 = vand.u32 2147483647, %v340_v51  ;;  %v353_v36 = vor.u32 1.1754944e-38, %v352_v40 }
 0x1c6   :  { %v264_v53 = vmul.f32 %v506_v31, %v263_v44  ;;  %v452_v59 = vclamps-f32 %v235_v46, 1.0  ;;  %v508_v12 = vpop.eup %507  ;;  %v192_v26 = vmul.f32 0.5, %v630_v39  ;;  %v193_v29 = vmul.f32 0.5, %v652_v55 }
 0x1c7   :  { %v309_v6 = vsel %vm308_vm8, %v709_v9, %v305_v30  ;;  %v342_v15 = vmul.f32 %v508_v12, %v340_v51  ;;  %vm347_vm11 = vweird.f32 %v508_v12  ;;  %v330_v41 = vmul.f32 %v329_v23, %v659_v61  ;;  %v490_v61 = vld [vmem:[%s777_s6] ss:$0 sm:$0xff] }
 0x1c8   :  { %v265_v57 = vadd.f32 %v506_v31, %v264_v53  ;;  %v358_v13 = vadd.f32 1.0, %v452_v59  ;;  %v314_v43 = vsel %vm311_vm10, %v313_v10, %v309_v6  ;;  %vm348_vm14 = vmor %vm346_vm13, %vm347_vm11  ;;  %vm351_vm15 = vcmp.eq.f32.partialorder %v350_v27, 8.507059e+37 }
 0x1c9   :  { %v343_v22 = vsub.f32 1.0, %v342_v15  ;;  %v315_v19 = vmul.f32 %v314_v43, %v290_v49 }
 0x1ca   :  { %v269_v2 = vsel %vm268_vm7, %v506_v31, %v265_v57  ;;  %v362_v9 = vmul.f32 %v358_v13, %v190_v17 }
 0x1cb   :  { %v274_v8 = vsel %vm271_vm9, %v273_v62, %v269_v2  ;;  %v344_v25 = vmul.f32 %v508_v12, %v343_v22  ;;  %v454_v28 = vclamps-f32 %v315_v19, 1.0 }
 0x1cc   :  { %v275_v11 = vmul.f32 %v274_v8, %v250_v48 }
 0x1cd   :  { %v345_v16 = vadd.f32 %v508_v12, %v344_v25  ;;  %v360_v33 = vadd.f32 1.0, %v454_v28 }
 0x1ce   :  { %v453_v14 = vclamps-f32 %v275_v11, 1.0 }
 0x1cf   :  { %v349_v45 = vsel %vm348_vm14, %v508_v12, %v345_v16  ;;  %v364_v37 = vmul.f32 %v360_v33, %v192_v26 }
 0x1d0   :  { %v359_v21 = vadd.f32 1.0, %v453_v14  ;;  %v354_v31 = vsel %vm351_vm15, %v353_v36, %v349_v45 }
 0x1d1   :  { %v355_v32 = vmul.f32 %v354_v31, %v330_v41 }
 0x1d2   :  { %v363_v24 = vmul.f32 %v359_v21, %v191_v18 }
 0x1d3   :  { %v455_v34 = vclamps-f32 %v355_v32, 1.0 }
 0x1d4   :  { %v366_v20 = vpack.c.bf16 %v363_v24, %v362_v9 }
 0x1d5   :  { %v361_v35 = vadd.f32 1.0, %v455_v34 }
 0x1d6   :  { %472 = vmatmul.msk.bf16.vlgmr.msra.gmra.mxu1 %vm404_vm12, %v366_v20 }
 0x1d7   :  { %v365_v38 = vmul.f32 %v361_v35, %v193_v29 }
 0x1d9   :  { %v367_v42 = vpack.c.bf16 %v365_v38, %v364_v37 }
 0x1db   :  { %473 = vmatmul.msk.bf16.vlgmr.msra.gmra.mxu2 %vm404_vm12, %v367_v42 }
 0x253   :  { %v420_v44 = vpop.f32.mrf.mxu1 }
 0x254   :  { %v421_v46 = vadd.f32 %v490_v61, %v420_v44 }
 0x256   :  { %v430_v47 = vadd.f32 %v421_v46, %v558_v1 }
 0x258   :  { %434 = vst.msk [vmem:[%s779_s7] sm:$0xff] %vm33_vm0, %v430_v47 }
 0x25b   :  { %v422_v39 = vpop.f32.mrf.mxu1 }
 0x25c   :  { %v423_v55 = vadd.f32 %v490_v61, %v422_v39 }
 0x25e   :  { %v431_v50 = vadd.f32 %v423_v55, %v572_v5  ;;  %v425_v51 = vpop.f32.mrf.mxu2 }
 0x25f   :  { %v426_v52 = vadd.f32 %v490_v61, %v425_v51 }
 0x260   :  { %435 = vst.msk [vmem:[%s779_s7 + $0x8] sm:$0xff] %vm33_vm0, %v431_v50 }
 0x261   :  { %v432_v53 = vadd.f32 %v426_v52, %v553_v0 }
 0x263   :  { %436 = vst.msk [vmem:[%s779_s7 + $0x10] sm:$0xff] %vm33_vm0, %v432_v53 }
 0x266   :  { %v427_v1 = vpop.f32.mrf.mxu2 }
 0x267   :  { %v428_v58 = vadd.f32 %v490_v61, %v427_v1 }
 0x269   :  { %v433_v54 = vadd.f32 %v428_v58, %v567_v4 }
 0x26b   :  { %437 = vst.msk [vmem:[%s779_s7 + $0x18] sm:$0xff] %vm33_vm0, %v433_v54 }

</bundles_post_ra>
